<compile_context>
chip_gen: v7x
topology: tpu7x:2x2x1
jax: 0.10.0
libtpu: 0.0.40
codegen_flags: <defaults>
</compile_context>

<pallas_src>
import functools

import jax
import jax.numpy as jnp
import numpy as np
from jax.experimental import pallas as pl
from jax.experimental.pallas import tpu as pltpu

EPS = 1e-5


def _shift_lanes(v, s):
    """result[:, p] = v[:, p + s] where in range, 0-fill elsewhere (static s)."""
    if s == 0:
        return v
    n = v.shape[1]
    pad = jnp.zeros((v.shape[0], abs(s)), v.dtype)
    if s > 0:
        return jnp.concatenate([v[:, s:], pad], axis=1)
    return jnp.concatenate([pad, v[:, :n + s]], axis=1)


def _resblock_kernel(N, H, W, C,
                     x_ref, w1_ref, w2_ref, g1_ref, be1_ref, g2_ref, be2_ref,
                     o_ref, col_ref):
    """Single-program kernel; everything is VMEM-resident at these shapes."""
    HW = H * W
    P = N * HW                      # BN reduction size (N*H*W pixels)
    inv_p = 1.0 / P

    x = x_ref[...]                  # (N, C, HW) f32, lane-dense
    # Batched (C, N*HW) slab: column block n is exactly x[n] (no transpose).
    xc = jnp.concatenate([x[n] for n in range(N)], axis=1)       # (C, P)
    r = jnp.maximum(xc, 0.0)                                     # ReLU #1 (f32)

    # ---- destination-lane validity masks (local pixel coords only) --------
    lane = jax.lax.broadcasted_iota(jnp.int32, (1, P), 1)
    loc = (lane & (HW - 1)) if (HW & (HW - 1)) == 0 else (lane % HW)
    lx = (loc & (W - 1)) if (W & (W - 1)) == 0 else (loc % W)
    dy_ok = (loc >= W, None, loc < HW - W)        # source row y-1 / y / y+1 valid
    dx_ok = (lx != 0, None, lx != W - 1)          # source col x-1 / x / x+1 valid

    # ---- im2col ------------------------------------------------------------
    # col[t*C + ci, n*HW + p] = relu(x)[n, ci, y+dy-1, x+dx-1] (0 if OOB),
    # t = dy*3 + dx, p = y*W + x.  A tap is a lane shift by s = (dy-1)*W+(dx-1);
    # the masks zero image-edge halos and any batch-boundary-crossing lane, so
    # each tap is ONE full-width, unmasked (C, N*HW) store.
    for dy in range(3):
        for dx in range(3):
            t = dy * 3 + dx
            s = (dy - 1) * W + (dx - 1)
            tap = _shift_lanes(r, s)
            m = dy_ok[dy]
            if dx_ok[dx] is not None:
                m = dx_ok[dx] if m is None else jnp.logical_and(m, dx_ok[dx])
            if m is not None:
                tap = jnp.where(m, tap, 0.0)
            col_ref[t * C:(t + 1) * C, :] = tap.astype(jnp.bfloat16)

    # ---- 3x3 conv: ONE (C, 9C) @ (9C, N*HW) MXU matmul (f32 accumulate) ----
    # (conv bias b1 omitted: exactly cancelled by the BN mean subtraction)
    acc = jnp.dot(w1_ref[...], col_ref[...],
                  preferred_element_type=jnp.float32)            # (C, P) f32

    # ---- BatchNorm #1: train-mode batch stats, biased var, one pass --------
    s1 = jnp.sum(acc, axis=1, keepdims=True)                     # (C, 1)
    q1 = jnp.sum(acc * acc, axis=1, keepdims=True)
    mu1 = s1 * inv_p
    var1 = q1 * inv_p - mu1 * mu1
    h = (acc - mu1) * jax.lax.rsqrt(var1 + EPS) * g1_ref[...] + be1_ref[...]

    # ---- ReLU #2 + 1x1 conv (channel matmul; bias b2 cancelled by BN #2) ---
    h = jnp.maximum(h, 0.0)
    c2 = jnp.dot(w2_ref[...], h.astype(jnp.bfloat16),
                 preferred_element_type=jnp.float32)             # (C, P) f32

    # ---- BatchNorm #2 -------------------------------------------------------
    s2 = jnp.sum(c2, axis=1, keepdims=True)
    q2 = jnp.sum(c2 * c2, axis=1, keepdims=True)
    mu2 = s2 * inv_p
    var2 = q2 * inv_p - mu2 * mu2
    h2 = (c2 - mu2) * jax.lax.rsqrt(var2 + EPS) * g2_ref[...] + be2_ref[...]

    # ---- Residual add; lane-dense (HW-wide) stores --------------------------
    for n in range(N):
        o_ref[n] = x[n] + h2[:, n * HW:(n + 1) * HW]


def resblock_pallas(x_nchw, w1, b1, g1, be1, w2, b2, g2, be2):
    """ResBlock forward.

    x_nchw : (N, C, H, W) float32   (PyTorch layout)
    w1     : (C, C, 3, 3)  OIHW weights of the 3x3 conv
    b1     : (C,)          3x3 conv bias  (redundant under train-mode BN)
    g1,be1 : (C,)          BatchNorm #1 weight / bias
    w2     : (C, C)        1x1 conv weights (Cout, Cin)
    b2     : (C,)          1x1 conv bias  (redundant under train-mode BN)
    g2,be2 : (C,)          BatchNorm #2 weight / bias
    """
    # b1 / b2 are accepted for interface parity but not sent to the kernel:
    # a per-channel constant bias is exactly removed by the BN mean subtraction.
    N, C, H, W = x_nchw.shape
    HW = H * W

    x3 = x_nchw.reshape(N, C, HW).astype(jnp.float32)            # free, lane-dense
    # (Cout, Cin, ky, kx) -> (Cout, ky, kx, Cin) -> (Cout, 9*Cin): row = t*C + ci
    w1_flat = jnp.transpose(w1, (0, 2, 3, 1)).reshape(C, 9 * C).astype(jnp.bfloat16)
    w2_mat = w2.reshape(C, C).astype(jnp.bfloat16)
    cvec = lambda v: v.reshape(C, 1).astype(jnp.float32)         # per-channel params

    kernel = functools.partial(_resblock_kernel, N, H, W, C)
    vmem = pl.BlockSpec(memory_space=pltpu.MemorySpace.VMEM)

    out3 = pl.pallas_call(
        kernel,
        out_shape=jax.ShapeDtypeStruct((N, C, HW), jnp.float32),
        in_specs=[vmem] * 7,
        out_specs=vmem,
        # im2col scratch: (9*C, N*H*W) bf16  (~0.3 MiB here; well under VMEM).
        scratch_shapes=[pltpu.VMEM((9 * C, N * HW), jnp.bfloat16)],
    )(x3, w1_flat, w2_mat, cvec(g1), cvec(be1), cvec(g2), cvec(be2))
    return out3.reshape(N, C, H, W)


def resblock_reference(x, w1, b1, g1, be1, w2, b2, g2, be2):
    """Pure-JAX reference with the exact PyTorch train-mode semantics."""
    bc = lambda v: v.reshape(1, -1, 1, 1)
    r = jax.nn.relu(x)
    c1 = jax.lax.conv_general_dilated(
        r, w1, window_strides=(1, 1), padding="SAME",
        dimension_numbers=("NCHW", "OIHW", "NCHW")) + bc(b1)
    mu1 = c1.mean(axis=(0, 2, 3), keepdims=True)
    v1 = ((c1 - mu1) ** 2).mean(axis=(0, 2, 3), keepdims=True)
    h = (c1 - mu1) / jnp.sqrt(v1 + EPS) * bc(g1) + bc(be1)
    h = jax.nn.relu(h)
    c2 = jnp.einsum("nchw,oc->nohw", h, w2) + bc(b2)
    mu2 = c2.mean(axis=(0, 2, 3), keepdims=True)
    v2 = ((c2 - mu2) ** 2).mean(axis=(0, 2, 3), keepdims=True)
    h2 = (c2 - mu2) / jnp.sqrt(v2 + EPS) * bc(g2) + bc(be2)
    return x + h2


if __name__ == "__main__":
    # ResBlock(dim=32) on a [2, 32, 16, 16] NCHW input.
    N, C, H, W = 2, 32, 16, 16

    key = jax.random.PRNGKey(0)
    ks = jax.random.split(key, 9)

    x = jax.random.normal(ks[0], (N, C, H, W), jnp.float32)          # NCHW
    w1 = 0.1 * jax.random.normal(ks[1], (C, C, 3, 3), jnp.float32)   # OIHW
    b1 = 0.05 * jax.random.normal(ks[2], (C,), jnp.float32)
    g1 = 1.0 + 0.1 * jax.random.normal(ks[3], (C,), jnp.float32)     # BN1 weight
    be1 = 0.1 * jax.random.normal(ks[4], (C,), jnp.float32)          # BN1 bias
    w2 = 0.1 * jax.random.normal(ks[5], (C, C), jnp.float32)         # 1x1 conv (Cout, Cin)
    b2 = 0.05 * jax.random.normal(ks[6], (C,), jnp.float32)
    g2 = 1.0 + 0.1 * jax.random.normal(ks[7], (C,), jnp.float32)     # BN2 weight
    be2 = 0.1 * jax.random.normal(ks[8], (C,), jnp.float32)          # BN2 bias

    out = resblock_pallas(x, w1, b1, g1, be1, w2, b2, g2, be2)
    out = jax.block_until_ready(out)

    ref = resblock_reference(x, w1, b1, g1, be1, w2, b2, g2, be2)
    # Tolerance accounts for bf16 MXU operands (f32 accumulation) followed by
    # BatchNorm renormalization; a genuine indexing/BN bug would be O(1) off.
    np.testing.assert_allclose(np.asarray(out), np.asarray(ref),
                               rtol=2e-2, atol=3e-2)

    print("KERNEL_OK")
</pallas_src>

<mosaic_0001>
module attributes {stable_mosaic.version = 11 : i64} {
  func.func @_resblock_kernel(%arg0: memref<2x32x256xf32, #tpu.memory_space<vmem>>, %arg1: memref<32x288xbf16, #tpu.memory_space<vmem>>, %arg2: memref<32x32xbf16, #tpu.memory_space<vmem>>, %arg3: memref<32x1xf32, #tpu.memory_space<vmem>>, %arg4: memref<32x1xf32, #tpu.memory_space<vmem>>, %arg5: memref<32x1xf32, #tpu.memory_space<vmem>>, %arg6: memref<32x1xf32, #tpu.memory_space<vmem>>, %arg7: memref<2x32x256xf32, #tpu.memory_space<vmem>>, %arg8: memref<288x512xbf16, #tpu.memory_space<vmem>>) attributes {dimension_semantics = [], scalar_prefetch = 0 : i64, scratch_operands = 1 : i64, tpu.core_type = #tpu.core_type<tc>} {
    %c0 = arith.constant 0 : index
    %c0_0 = arith.constant 0 : index
    %c0_1 = arith.constant 0 : index
    %0 = vector.load %arg0[%c0, %c0_0, %c0_1] : memref<2x32x256xf32, #tpu.memory_space<vmem>>, vector<2x32x256xf32>
    %1 = vector.extract_strided_slice %0 {offsets = [0, 0, 0], sizes = [1, 32, 256], strides = [1, 1, 1]} : vector<2x32x256xf32> to vector<1x32x256xf32>
    %2 = vector.shape_cast %1 : vector<1x32x256xf32> to vector<32x256xf32>
    %3 = vector.extract_strided_slice %0 {offsets = [1, 0, 0], sizes = [1, 32, 256], strides = [1, 1, 1]} : vector<2x32x256xf32> to vector<1x32x256xf32>
    %4 = vector.shape_cast %3 : vector<1x32x256xf32> to vector<32x256xf32>
    %5 = tpu.concatenate %2, %4 in 1 : vector<32x256xf32>, vector<32x256xf32> -> vector<32x512xf32>
    %cst = arith.constant 0.000000e+00 : f32
    %6 = vector.broadcast %cst : f32 to vector<32x512xf32>
    %7 = arith.maximumf %5, %6 : vector<32x512xf32>
    %8 = tpu.iota {dimensions = array<i32: 1>} : vector<1x512xi32>
    %c255_i32 = arith.constant 255 : i32
    %9 = vector.broadcast %c255_i32 : i32 to vector<1x512xi32>
    %10 = arith.andi %8, %9 : vector<1x512xi32>
    %c15_i32 = arith.constant 15 : i32
    %11 = vector.broadcast %c15_i32 : i32 to vector<1x512xi32>
    %12 = arith.andi %10, %11 : vector<1x512xi32>
    %c16_i32 = arith.constant 16 : i32
    %13 = vector.broadcast %c16_i32 : i32 to vector<1x512xi32>
    %14 = arith.cmpi sge, %10, %13 : vector<1x512xi32>
    %c240_i32 = arith.constant 240 : i32
    %15 = vector.broadcast %c240_i32 : i32 to vector<1x512xi32>
    %16 = arith.cmpi slt, %10, %15 : vector<1x512xi32>
    %c0_i32 = arith.constant 0 : i32
    %17 = vector.broadcast %c0_i32 : i32 to vector<1x512xi32>
    %18 = arith.cmpi ne, %12, %17 : vector<1x512xi32>
    %c15_i32_2 = arith.constant 15 : i32
    %19 = vector.broadcast %c15_i32_2 : i32 to vector<1x512xi32>
    %20 = arith.cmpi ne, %12, %19 : vector<1x512xi32>
    %cst_3 = arith.constant 0.000000e+00 : f32
    %21 = vector.broadcast %cst_3 : f32 to vector<32x17xf32>
    %22 = vector.extract_strided_slice %7 {offsets = [0, 0], sizes = [32, 495], strides = [1, 1]} : vector<32x512xf32> to vector<32x495xf32>
    %23 = tpu.concatenate %21, %22 in 1 : vector<32x17xf32>, vector<32x495xf32> -> vector<32x512xf32>
    %24 = arith.andi %14, %18 : vector<1x512xi1>
    %cst_4 = arith.constant 0.000000e+00 : f32
    %25 = vector.shape_cast %24 : vector<1x512xi1> to vector<1x512xi1>
    %26 = vector.broadcast %25 : vector<1x512xi1> to vector<32x512xi1>
    %27 = vector.broadcast %cst_4 : f32 to vector<32x512xf32>
    %28 = arith.select %26, %23, %27 : vector<32x512xi1>, vector<32x512xf32>
    %29 = arith.truncf %28 : vector<32x512xf32> to vector<32x512xbf16>
    %c0_5 = arith.constant 0 : index
    %c0_6 = arith.constant 0 : index
    %30 = vector.load %arg8[%c0_5, %c0_6] : memref<288x512xbf16, #tpu.memory_space<vmem>>, vector<32x512xbf16>
    tpu.vector_store %arg8[%c0_5, %c0_6], %29 {strides = array<i32>} : memref<288x512xbf16, #tpu.memory_space<vmem>>, vector<32x512xbf16>,
    %cst_7 = arith.constant 0.000000e+00 : f32
    %31 = vector.broadcast %cst_7 : f32 to vector<32x16xf32>
    %32 = vector.extract_strided_slice %7 {offsets = [0, 0], sizes = [32, 496], strides = [1, 1]} : vector<32x512xf32> to vector<32x496xf32>
    %33 = tpu.concatenate %31, %32 in 1 : vector<32x16xf32>, vector<32x496xf32> -> vector<32x512xf32>
    %cst_8 = arith.constant 0.000000e+00 : f32
    %34 = vector.shape_cast %14 : vector<1x512xi1> to vector<1x512xi1>
    %35 = vector.broadcast %34 : vector<1x512xi1> to vector<32x512xi1>
    %36 = vector.broadcast %cst_8 : f32 to vector<32x512xf32>
    %37 = arith.select %35, %33, %36 : vector<32x512xi1>, vector<32x512xf32>
    %38 = arith.truncf %37 : vector<32x512xf32> to vector<32x512xbf16>
    %c32 = arith.constant 32 : index
    %c0_9 = arith.constant 0 : index
    %39 = vector.load %arg8[%c32, %c0_9] : memref<288x512xbf16, #tpu.memory_space<vmem>>, vector<32x512xbf16>
    tpu.vector_store %arg8[%c32, %c0_9], %38 {strides = array<i32>} : memref<288x512xbf16, #tpu.memory_space<vmem>>, vector<32x512xbf16>,
    %cst_10 = arith.constant 0.000000e+00 : f32
    %40 = vector.broadcast %cst_10 : f32 to vector<32x15xf32>
    %41 = vector.extract_strided_slice %7 {offsets = [0, 0], sizes = [32, 497], strides = [1, 1]} : vector<32x512xf32> to vector<32x497xf32>
    %42 = tpu.concatenate %40, %41 in 1 : vector<32x15xf32>, vector<32x497xf32> -> vector<32x512xf32>
    %43 = arith.andi %14, %20 : vector<1x512xi1>
    %cst_11 = arith.constant 0.000000e+00 : f32
    %44 = vector.shape_cast %43 : vector<1x512xi1> to vector<1x512xi1>
    %45 = vector.broadcast %44 : vector<1x512xi1> to vector<32x512xi1>
    %46 = vector.broadcast %cst_11 : f32 to vector<32x512xf32>
    %47 = arith.select %45, %42, %46 : vector<32x512xi1>, vector<32x512xf32>
    %48 = arith.truncf %47 : vector<32x512xf32> to vector<32x512xbf16>
    %c64 = arith.constant 64 : index
    %c0_12 = arith.constant 0 : index
    %49 = vector.load %arg8[%c64, %c0_12] : memref<288x512xbf16, #tpu.memory_space<vmem>>, vector<32x512xbf16>
    tpu.vector_store %arg8[%c64, %c0_12], %48 {strides = array<i32>} : memref<288x512xbf16, #tpu.memory_space<vmem>>, vector<32x512xbf16>,
    %cst_13 = arith.constant 0.000000e+00 : f32
    %50 = vector.broadcast %cst_13 : f32 to vector<32x1xf32>
    %51 = vector.extract_strided_slice %7 {offsets = [0, 0], sizes = [32, 511], strides = [1, 1]} : vector<32x512xf32> to vector<32x511xf32>
    %52 = tpu.concatenate %50, %51 in 1 : vector<32x1xf32>, vector<32x511xf32> -> vector<32x512xf32>
    %cst_14 = arith.constant 0.000000e+00 : f32
    %53 = vector.shape_cast %18 : vector<1x512xi1> to vector<1x512xi1>
    %54 = vector.broadcast %53 : vector<1x512xi1> to vector<32x512xi1>
    %55 = vector.broadcast %cst_14 : f32 to vector<32x512xf32>
    %56 = arith.select %54, %52, %55 : vector<32x512xi1>, vector<32x512xf32>
    %57 = arith.truncf %56 : vector<32x512xf32> to vector<32x512xbf16>
    %c96 = arith.constant 96 : index
    %c0_15 = arith.constant 0 : index
    %58 = vector.load %arg8[%c96, %c0_15] : memref<288x512xbf16, #tpu.memory_space<vmem>>, vector<32x512xbf16>
    tpu.vector_store %arg8[%c96, %c0_15], %57 {strides = array<i32>} : memref<288x512xbf16, #tpu.memory_space<vmem>>, vector<32x512xbf16>,
    %59 = arith.truncf %7 : vector<32x512xf32> to vector<32x512xbf16>
    %c128 = arith.constant 128 : index
    %c0_16 = arith.constant 0 : index
    %60 = vector.load %arg8[%c128, %c0_16] : memref<288x512xbf16, #tpu.memory_space<vmem>>, vector<32x512xbf16>
    tpu.vector_store %arg8[%c128, %c0_16], %59 {strides = array<i32>} : memref<288x512xbf16, #tpu.memory_space<vmem>>, vector<32x512xbf16>,
    %cst_17 = arith.constant 0.000000e+00 : f32
    %61 = vector.broadcast %cst_17 : f32 to vector<32x1xf32>
    %62 = vector.extract_strided_slice %7 {offsets = [0, 1], sizes = [32, 511], strides = [1, 1]} : vector<32x512xf32> to vector<32x511xf32>
    %63 = tpu.concatenate %62, %61 in 1 : vector<32x511xf32>, vector<32x1xf32> -> vector<32x512xf32>
    %cst_18 = arith.constant 0.000000e+00 : f32
    %64 = vector.shape_cast %20 : vector<1x512xi1> to vector<1x512xi1>
    %65 = vector.broadcast %64 : vector<1x512xi1> to vector<32x512xi1>
    %66 = vector.broadcast %cst_18 : f32 to vector<32x512xf32>
    %67 = arith.select %65, %63, %66 : vector<32x512xi1>, vector<32x512xf32>
    %68 = arith.truncf %67 : vector<32x512xf32> to vector<32x512xbf16>
    %c160 = arith.constant 160 : index
    %c0_19 = arith.constant 0 : index
    %69 = vector.load %arg8[%c160, %c0_19] : memref<288x512xbf16, #tpu.memory_space<vmem>>, vector<32x512xbf16>
    tpu.vector_store %arg8[%c160, %c0_19], %68 {strides = array<i32>} : memref<288x512xbf16, #tpu.memory_space<vmem>>, vector<32x512xbf16>,
    %cst_20 = arith.constant 0.000000e+00 : f32
    %70 = vector.broadcast %cst_20 : f32 to vector<32x15xf32>
    %71 = vector.extract_strided_slice %7 {offsets = [0, 15], sizes = [32, 497], strides = [1, 1]} : vector<32x512xf32> to vector<32x497xf32>
    %72 = tpu.concatenate %71, %70 in 1 : vector<32x497xf32>, vector<32x15xf32> -> vector<32x512xf32>
    %73 = arith.andi %16, %18 : vector<1x512xi1>
    %cst_21 = arith.constant 0.000000e+00 : f32
    %74 = vector.shape_cast %73 : vector<1x512xi1> to vector<1x512xi1>
    %75 = vector.broadcast %74 : vector<1x512xi1> to vector<32x512xi1>
    %76 = vector.broadcast %cst_21 : f32 to vector<32x512xf32>
    %77 = arith.select %75, %72, %76 : vector<32x512xi1>, vector<32x512xf32>
    %78 = arith.truncf %77 : vector<32x512xf32> to vector<32x512xbf16>
    %c192 = arith.constant 192 : index
    %c0_22 = arith.constant 0 : index
    %79 = vector.load %arg8[%c192, %c0_22] : memref<288x512xbf16, #tpu.memory_space<vmem>>, vector<32x512xbf16>
    tpu.vector_store %arg8[%c192, %c0_22], %78 {strides = array<i32>} : memref<288x512xbf16, #tpu.memory_space<vmem>>, vector<32x512xbf16>,
    %cst_23 = arith.constant 0.000000e+00 : f32
    %80 = vector.broadcast %cst_23 : f32 to vector<32x16xf32>
    %81 = vector.extract_strided_slice %7 {offsets = [0, 16], sizes = [32, 496], strides = [1, 1]} : vector<32x512xf32> to vector<32x496xf32>
    %82 = tpu.concatenate %81, %80 in 1 : vector<32x496xf32>, vector<32x16xf32> -> vector<32x512xf32>
    %cst_24 = arith.constant 0.000000e+00 : f32
    %83 = vector.shape_cast %16 : vector<1x512xi1> to vector<1x512xi1>
    %84 = vector.broadcast %83 : vector<1x512xi1> to vector<32x512xi1>
    %85 = vector.broadcast %cst_24 : f32 to vector<32x512xf32>
    %86 = arith.select %84, %82, %85 : vector<32x512xi1>, vector<32x512xf32>
    %87 = arith.truncf %86 : vector<32x512xf32> to vector<32x512xbf16>
    %c224 = arith.constant 224 : index
    %c0_25 = arith.constant 0 : index
    %88 = vector.load %arg8[%c224, %c0_25] : memref<288x512xbf16, #tpu.memory_space<vmem>>, vector<32x512xbf16>
    tpu.vector_store %arg8[%c224, %c0_25], %87 {strides = array<i32>} : memref<288x512xbf16, #tpu.memory_space<vmem>>, vector<32x512xbf16>,
    %cst_26 = arith.constant 0.000000e+00 : f32
    %89 = vector.broadcast %cst_26 : f32 to vector<32x17xf32>
    %90 = vector.extract_strided_slice %7 {offsets = [0, 17], sizes = [32, 495], strides = [1, 1]} : vector<32x512xf32> to vector<32x495xf32>
    %91 = tpu.concatenate %90, %89 in 1 : vector<32x495xf32>, vector<32x17xf32> -> vector<32x512xf32>
    %92 = arith.andi %16, %20 : vector<1x512xi1>
    %cst_27 = arith.constant 0.000000e+00 : f32
    %93 = vector.shape_cast %92 : vector<1x512xi1> to vector<1x512xi1>
    %94 = vector.broadcast %93 : vector<1x512xi1> to vector<32x512xi1>
    %95 = vector.broadcast %cst_27 : f32 to vector<32x512xf32>
    %96 = arith.select %94, %91, %95 : vector<32x512xi1>, vector<32x512xf32>
    %97 = arith.truncf %96 : vector<32x512xf32> to vector<32x512xbf16>
    %c256 = arith.constant 256 : index
    %c0_28 = arith.constant 0 : index
    %98 = vector.load %arg8[%c256, %c0_28] : memref<288x512xbf16, #tpu.memory_space<vmem>>, vector<32x512xbf16>
    tpu.vector_store %arg8[%c256, %c0_28], %97 {strides = array<i32>} : memref<288x512xbf16, #tpu.memory_space<vmem>>, vector<32x512xbf16>,
    %c0_29 = arith.constant 0 : index
    %c0_30 = arith.constant 0 : index
    %99 = vector.load %arg1[%c0_29, %c0_30] : memref<32x288xbf16, #tpu.memory_space<vmem>>, vector<32x288xbf16>
    %c0_31 = arith.constant 0 : index
    %c0_32 = arith.constant 0 : index
    %100 = vector.load %arg8[%c0_31, %c0_32] : memref<288x512xbf16, #tpu.memory_space<vmem>>, vector<288x512xbf16>
    %cst_33 = arith.constant dense<0.000000e+00> : vector<32x512xf32>
    %101 = tpu.matmul %99, %100, %cst_33 {dimension_numbers = #tpu.dot_dimension_numbers<[1], [0], [0], [1], [0, 0, 1, 1], [], []>} : vector<32x288xbf16>, vector<288x512xbf16>, vector<32x512xf32> -> vector<32x512xf32>
    %cst_34 = arith.constant dense<0.000000e+00> : vector<32xf32>
    %102 = vector.multi_reduction <add>, %101, %cst_34 [1] : vector<32x512xf32> to vector<32xf32>
    %103 = vector.shape_cast %102 : vector<32xf32> to vector<32x1xf32>
    %104 = arith.mulf %101, %101 : vector<32x512xf32>
    %cst_35 = arith.constant dense<0.000000e+00> : vector<32xf32>
    %105 = vector.multi_reduction <add>, %104, %cst_35 [1] : vector<32x512xf32> to vector<32xf32>
    %106 = vector.shape_cast %105 : vector<32xf32> to vector<32x1xf32>
    %cst_36 = arith.constant 0.001953125 : f32
    %107 = vector.broadcast %cst_36 : f32 to vector<32x1xf32>
    %108 = arith.mulf %103, %107 : vector<32x1xf32>
    %cst_37 = arith.constant 0.001953125 : f32
    %109 = vector.broadcast %cst_37 : f32 to vector<32x1xf32>
    %110 = arith.mulf %106, %109 : vector<32x1xf32>
    %111 = arith.mulf %108, %108 : vector<32x1xf32>
    %112 = arith.subf %110, %111 : vector<32x1xf32>
    %113 = vector.broadcast %108 : vector<32x1xf32> to vector<32x512xf32>
    %114 = arith.subf %101, %113 : vector<32x512xf32>
    %cst_38 = arith.constant 9.99999974E-6 : f32
    %115 = vector.broadcast %cst_38 : f32 to vector<32x1xf32>
    %116 = arith.addf %112, %115 : vector<32x1xf32>
    %117 = math.rsqrt %116 : vector<32x1xf32>
    %118 = vector.broadcast %117 : vector<32x1xf32> to vector<32x512xf32>
    %119 = arith.mulf %114, %118 : vector<32x512xf32>
    %c0_39 = arith.constant 0 : index
    %c0_40 = arith.constant 0 : index
    %120 = vector.load %arg3[%c0_39, %c0_40] : memref<32x1xf32, #tpu.memory_space<vmem>>, vector<32x1xf32>
    %121 = vector.broadcast %120 : vector<32x1xf32> to vector<32x512xf32>
    %122 = arith.mulf %119, %121 : vector<32x512xf32>
    %c0_41 = arith.constant 0 : index
    %c0_42 = arith.constant 0 : index
    %123 = vector.load %arg4[%c0_41, %c0_42] : memref<32x1xf32, #tpu.memory_space<vmem>>, vector<32x1xf32>
    %124 = vector.broadcast %123 : vector<32x1xf32> to vector<32x512xf32>
    %125 = arith.addf %122, %124 : vector<32x512xf32>
    %cst_43 = arith.constant 0.000000e+00 : f32
    %126 = vector.broadcast %cst_43 : f32 to vector<32x512xf32>
    %127 = arith.maximumf %125, %126 : vector<32x512xf32>
    %c0_44 = arith.constant 0 : index
    %c0_45 = arith.constant 0 : index
    %128 = vector.load %arg2[%c0_44, %c0_45] : memref<32x32xbf16, #tpu.memory_space<vmem>>, vector<32x32xbf16>
    %129 = arith.truncf %127 : vector<32x512xf32> to vector<32x512xbf16>
    %cst_46 = arith.constant dense<0.000000e+00> : vector<32x512xf32>
    %130 = tpu.matmul %128, %129, %cst_46 {dimension_numbers = #tpu.dot_dimension_numbers<[1], [0], [0], [1], [0, 0, 1, 1], [], []>} : vector<32x32xbf16>, vector<32x512xbf16>, vector<32x512xf32> -> vector<32x512xf32>
    %cst_47 = arith.constant dense<0.000000e+00> : vector<32xf32>
    %131 = vector.multi_reduction <add>, %130, %cst_47 [1] : vector<32x512xf32> to vector<32xf32>
    %132 = vector.shape_cast %131 : vector<32xf32> to vector<32x1xf32>
    %133 = arith.mulf %130, %130 : vector<32x512xf32>
    %cst_48 = arith.constant dense<0.000000e+00> : vector<32xf32>
    %134 = vector.multi_reduction <add>, %133, %cst_48 [1] : vector<32x512xf32> to vector<32xf32>
    %135 = vector.shape_cast %134 : vector<32xf32> to vector<32x1xf32>
    %cst_49 = arith.constant 0.001953125 : f32
    %136 = vector.broadcast %cst_49 : f32 to vector<32x1xf32>
    %137 = arith.mulf %132, %136 : vector<32x1xf32>
    %cst_50 = arith.constant 0.001953125 : f32
    %138 = vector.broadcast %cst_50 : f32 to vector<32x1xf32>
    %139 = arith.mulf %135, %138 : vector<32x1xf32>
    %140 = arith.mulf %137, %137 : vector<32x1xf32>
    %141 = arith.subf %139, %140 : vector<32x1xf32>
    %142 = vector.broadcast %137 : vector<32x1xf32> to vector<32x512xf32>
    %143 = arith.subf %130, %142 : vector<32x512xf32>
    %cst_51 = arith.constant 9.99999974E-6 : f32
    %144 = vector.broadcast %cst_51 : f32 to vector<32x1xf32>
    %145 = arith.addf %141, %144 : vector<32x1xf32>
    %146 = math.rsqrt %145 : vector<32x1xf32>
    %147 = vector.broadcast %146 : vector<32x1xf32> to vector<32x512xf32>
    %148 = arith.mulf %143, %147 : vector<32x512xf32>
    %c0_52 = arith.constant 0 : index
    %c0_53 = arith.constant 0 : index
    %149 = vector.load %arg5[%c0_52, %c0_53] : memref<32x1xf32, #tpu.memory_space<vmem>>, vector<32x1xf32>
    %150 = vector.broadcast %149 : vector<32x1xf32> to vector<32x512xf32>
    %151 = arith.mulf %148, %150 : vector<32x512xf32>
    %c0_54 = arith.constant 0 : index
    %c0_55 = arith.constant 0 : index
    %152 = vector.load %arg6[%c0_54, %c0_55] : memref<32x1xf32, #tpu.memory_space<vmem>>, vector<32x1xf32>
    %153 = vector.broadcast %152 : vector<32x1xf32> to vector<32x512xf32>
    %154 = arith.addf %151, %153 : vector<32x512xf32>
    %155 = vector.extract_strided_slice %0 {offsets = [0, 0, 0], sizes = [1, 32, 256], strides = [1, 1, 1]} : vector<2x32x256xf32> to vector<1x32x256xf32>
    %156 = vector.shape_cast %155 : vector<1x32x256xf32> to vector<32x256xf32>
    %157 = vector.extract_strided_slice %154 {offsets = [0, 0], sizes = [32, 256], strides = [1, 1]} : vector<32x512xf32> to vector<32x256xf32>
    %158 = arith.addf %156, %157 : vector<32x256xf32>
    %c0_56 = arith.constant 0 : index
    %c0_57 = arith.constant 0 : index
    %c0_58 = arith.constant 0 : index
    %159 = vector.load %arg7[%c0_56, %c0_57, %c0_58] : memref<2x32x256xf32, #tpu.memory_space<vmem>>, vector<1x32x256xf32>
    %160 = vector.shape_cast %159 : vector<1x32x256xf32> to vector<32x256xf32>
    %161 = vector.shape_cast %158 : vector<32x256xf32> to vector<1x32x256xf32>
    tpu.vector_store %arg7[%c0_56, %c0_57, %c0_58], %161 {strides = array<i32>} : memref<2x32x256xf32, #tpu.memory_space<vmem>>, vector<1x32x256xf32>,
    %162 = vector.extract_strided_slice %0 {offsets = [1, 0, 0], sizes = [1, 32, 256], strides = [1, 1, 1]} : vector<2x32x256xf32> to vector<1x32x256xf32>
    %163 = vector.shape_cast %162 : vector<1x32x256xf32> to vector<32x256xf32>
    %164 = vector.extract_strided_slice %154 {offsets = [0, 256], sizes = [32, 256], strides = [1, 1]} : vector<32x512xf32> to vector<32x256xf32>
    %165 = arith.addf %163, %164 : vector<32x256xf32>
    %c1 = arith.constant 1 : index
    %c0_59 = arith.constant 0 : index
    %c0_60 = arith.constant 0 : index
    %166 = vector.load %arg7[%c1, %c0_59, %c0_60] : memref<2x32x256xf32, #tpu.memory_space<vmem>>, vector<1x32x256xf32>
    %167 = vector.shape_cast %166 : vector<1x32x256xf32> to vector<32x256xf32>
    %168 = vector.shape_cast %165 : vector<32x256xf32> to vector<1x32x256xf32>
    tpu.vector_store %arg7[%c1, %c0_59, %c0_60], %168 {strides = array<i32>} : memref<2x32x256xf32, #tpu.memory_space<vmem>>, vector<1x32x256xf32>,
    return
  }
}

</mosaic_0001>

<bundles_post_ra>
// kernel: tpu_custom_call.1
= control target key start
LH: loop header
LB: loop body
LE: loop exit
PB: predicated region body
PF: predicated region fallthrough
CT: control target
= control target key end

     0   :  { %12 = vsyncpa [#allocation4], 0  ;;  %s3772_s0 = inlined_call_operand.vmem [shape: f32[2,32,256], index: 0, kind: input, shape index: {}]   ;;  %s3773_s1 = inlined_call_operand.hbm [shape: bf16[32,288], index: 1, kind: input, shape index: {}]   ;;  %s3774_s2 = inlined_call_operand.hbm [shape: bf16[32,32], index: 2, kind: input, shape index: {}]   ;;  %s3775_s3 = inlined_call_operand.vmem [shape: f32[32,1], index: 3, kind: input, shape index: {}]   ;;  %s3776_s4 = inlined_call_operand.vmem [shape: f32[32,1], index: 4, kind: input, shape index: {}]   ;;  %s3777_s5 = inlined_call_operand.vmem [shape: f32[32,1], index: 5, kind: input, shape index: {}]   ;;  %s3778_s6 = inlined_call_operand.vmem [shape: f32[32,1], index: 6, kind: input, shape index: {}]   ;;  %s3779_s7 = inlined_call_operand.hbm [shape: f32[2,32,256], index: 7, kind: output, shape index: {}]  }
   0x1   :  { %13 = vsyncpa [#allocation7], 0 }
   0x2   :  { %14 = vsyncpa [#allocation5], 0  ;;  %s2572_s24 = smov [#allocation3]   ;;  %s2500_s28 = scalar_lea.hbm %s3773_s1, 768 }
   0x3   :  { %s22_s25 = sshll.u32 %s2572_s24, 4  ;;  %p2501_p0 = scmp.ne.s32.totalorder %s3773_s1, %s2500_s28  ;;  %s23_s25 = int_to_ptr.vmem [resolvable:$true] %s22_s25 }
   0x4   :  { %p2504_p1 = scmp.lt.u32.totalorder %s2500_s28, %s3773_s1 }
   0x6   :  { %p2506_p2 = pnand %p2504_p1, %p2501_p0 }
   0x8   :  { %2509 = shalt.err (!%p2506_p2)
}
   0x9   :  { %s2510_s10 = scalar_lea.vmem %s23_s25, 768  ;;  %p2515_p4 = scmp.lt.s32.totalorder %s23_s25, %s23_s25 }
   0xa   :  { %p2511_p3 = scmp.ne.s32.totalorder %s23_s25, %s2510_s10  ;;  %p2516_p5 = scmp.lt.s32.totalorder %s2510_s10, %s2510_s10 }
   0xc   :  { %p2517_p6 = por %p2516_p5, %p2515_p4 }
   0xe   :  { %p2518_p7 = pnand %p2517_p6, %p2511_p3 }
  0x10   :  { %2521 = shalt.err (!%p2518_p7)
}
  0x11   :  { %s2573_s11 = smov 192   ;;  %s2574_s12 = smov 12  }
  0x12   :  { %28 = dma.hbm_to_vmem [thread:$0]  %s3773_s1, 768, %s23_s25, [#allocation4], %s2573_s11, %s2573_s11, %s2574_s12  }
  0x13   :  { %s2575_s15 = smov [#allocation6]   ;;  %s2522_s19 = scalar_lea.hbm %s3774_s2, 256 }
  0x14   :  { %s34_s16 = sshll.u32 %s2575_s15, 4  ;;  %p2523_p8 = scmp.ne.s32.totalorder %s3774_s2, %s2522_s19  ;;  %s35_s16 = int_to_ptr.vmem [resolvable:$true] %s34_s16 }
  0x15   :  { %p2526_p9 = scmp.lt.u32.totalorder %s2522_s19, %s3774_s2 }
  0x17   :  { %p2528_p10 = pnand %p2526_p9, %p2523_p8 }
  0x19   :  { %2531 = shalt.err (!%p2528_p10)
}
  0x1a   :  { %s2532_s24 = scalar_lea.vmem %s35_s16, 256  ;;  %p2537_p12 = scmp.lt.s32.totalorder %s35_s16, %s35_s16 }
  0x1b   :  { %p2533_p11 = scmp.ne.s32.totalorder %s35_s16, %s2532_s24  ;;  %p2538_p13 = scmp.lt.s32.totalorder %s2532_s24, %s2532_s24 }
  0x1d   :  { %p2539_p0 = por %p2538_p13, %p2537_p12 }
  0x1f   :  { %p2540_p1 = pnand %p2539_p0, %p2533_p11 }
  0x21   :  { %2543 = shalt.err (!%p2540_p1)
}
  0x22   :  { %s2576_s1 = smov 64   ;;  %s2577_s25 = smov 4  }
  0x23   :  { %40 = dma.hbm_to_vmem [thread:$0]  %s3774_s2, 256, %s35_s16, [#allocation7], %s2576_s1, %s2576_s1, %s2577_s25  }
  0x24   :  { %2566 = dma.done.wait [#allocation4], 768  }
  0x25   :  { %2567 = vsyncadd [#allocation4], 4294966528 }
  0x26   :  { %2568 = dma.done.wait [#allocation7], 256  }
  0x27   :  { %2569 = vsyncadd [#allocation7], 4294967040  ;;  %v64_v0 = vld [vmem:[%s3772_s0 + $0x40] sm:$0xff]  ;;  %v65_v1 = vld [vmem:[%s3772_s0 + $0x48] sm:$0xff]  ;;  %s2578_s8 = smov 17   ;;  %s2579_s12 = smov 16   ;;  %v88_v48 = vlaneseq }
  0x28   :  { %v56_v2 = vld [vmem:[%s3772_s0] sm:$0xff]  ;;  %v2662_v3 = vmax.f32 %v64_v0, 0.0  ;;  %v2664_v4 = vmax.f32 %v65_v1, 0.0  ;;  %v57_v5 = vld [vmem:[%s3772_s0 + $0x8] sm:$0xff]  ;;  %v66_v7 = vld [vmem:[%s3772_s0 + $0x50] sm:$0xff]  ;;  %s2580_s13 = smov 15  }
  0x29   :  { %v2669_v6 = vmax.f32 %v56_v2, 0.0  ;;  %v67_v8 = vld [vmem:[%s3772_s0 + $0x58] sm:$0xff]  ;;  %v2677_v9 = vmax.f32 %v57_v5, 0.0  ;;  %v2679_v10 = vmax.f32 %v66_v7, 0.0  ;;  %v58_v12 = vld [vmem:[%s3772_s0 + $0x10] sm:$0xff]  ;;  %v60_v19 = vld [vmem:[%s3772_s0 + $0x20] sm:$0xff] }
  0x2a   :  { %v2681_v11 = vmax.f32 %v67_v8, 0.0  ;;  %v59_v13 = vld [vmem:[%s3772_s0 + $0x18] sm:$0xff]  ;;  %v62_v14 = vld [vmem:[%s3772_s0 + $0x30] sm:$0xff]  ;;  %v2694_v15 = vpack.i.bf16 %v2664_v4, %v2662_v3  ;;  %v2696_v16 = vmax.f32 %v58_v12, 0.0  ;;  %v61_v20 = vld [vmem:[%s3772_s0 + $0x28] sm:$0xff]  ;;  %v2734_v30 = vmax.f32 %v60_v19, 0.0 }
  0x2b   :  { %v2698_v17 = vmax.f32 %v59_v13, 0.0  ;;  %v63_v18 = vld [vmem:[%s3772_s0 + $0x38] sm:$0xff]  ;;  %v2136_v21 = vpack.i.bf16 %v2677_v9, %v2669_v6  ;;  %v70_v22 = vld [vmem:[%s3772_s0 + $0x70] sm:$0xff]  ;;  %v2721_v25 = vmax.f32 %v62_v14, 0.0  ;;  %v68_v27 = vld [vmem:[%s3772_s0 + $0x60] sm:$0xff]  ;;  %v2736_v31 = vmax.f32 %v61_v20, 0.0 }
  0x2c   :  { %v71_v23 = vld [vmem:[%s3772_s0 + $0x78] sm:$0xff]  ;;  %2147 = vrot.lane.b32.xlu1 %v2694_v15, %s2578_s8  ;;  %v2151_v24 = vpack.i.bf16 %v2681_v11, %v2679_v10  ;;  %v2723_v26 = vmax.f32 %v63_v18, 0.0  ;;  %v69_v28 = vld [vmem:[%s3772_s0 + $0x68] sm:$0xff]  ;;  %v2741_v33 = vmax.f32 %v70_v22, 0.0  ;;  %v2748_v36 = vmax.f32 %v68_v27, 0.0  ;;  %s2581_s14 = smov 1  }
  0x2d   :  { %2137 = vrot.lane.b32.xlu0 %v2136_v21, %s2578_s8  ;;  %v2141_v29 = vpack.i.bf16 %v2698_v17, %v2696_v16  ;;  %v2743_v34 = vmax.f32 %v71_v23, 0.0  ;;  %v2156_v35 = vpack.i.bf16 %v2736_v31, %v2734_v30  ;;  %v2750_v37 = vmax.f32 %v69_v28, 0.0  ;;  %s2582_s15 = smov 127   ;;  %s2583_s16 = smov 113   ;;  %v2460_v7 = vld [vmem:[#allocation3 + $0x4] ss:$12 sps:$4 sm:$0xff]  }
  0x2e   :  { %v2161_v32 = vpack.i.bf16 %v2723_v26, %v2721_v25  ;;  %v2757_v39 = vpack.i.bf16 %v2662_v3, %v2677_v9  ;;  %v2764_v41 = vpack.i.bf16 %v2681_v11, %v2664_v4  ;;  %v2768_v42 = vpack.i.bf16 %v2696_v16, %v2669_v6  ;;  %s2584_s17 = smov 112   ;;  %1154 = vmatprep.mubr.bf16.mxu0 %v2460_v7  ;;  %s2585_s18 = smov 111   ;;  %v2461_v0 = vld [vmem:[#allocation3 + $0x1c] ss:$12 sps:$4 sm:$0xff]  }
  0x2f   :  { %v2171_v38 = vpack.i.bf16 %v2743_v34, %v2741_v33  ;;  %v2166_v40 = vpack.i.bf16 %v2750_v37, %v2748_v36  ;;  %v2772_v43 = vpack.i.bf16 %v2743_v34, %v2750_v37  ;;  %v2776_v44 = vpack.i.bf16 %v2721_v25, %v2734_v30  ;;  %1260 = vmatprep.mubr.bf16.mxu1 %v2460_v7 }
  0x30   :  { %2152 = vrot.lane.b32.xlu1 %v2151_v24, %s2578_s8  ;;  %v2780_v45 = vpack.i.bf16 %v2679_v10, %v2698_v17  ;;  %v2784_v46 = vpack.i.bf16 %v2741_v33, %v2723_v26  ;;  %v2788_v47 = vpack.i.bf16 %v2748_v36, %v2736_v31  ;;  %v562_v49 = vpack.c.bf16 %v2698_v17, %v2677_v9 }
  0x31   :  { %2142 = vrot.lane.b32.xlu0 %v2141_v29, %s2578_s8  ;;  %v561_v50 = vpack.c.bf16 %v2696_v16, %v2669_v6  ;;  %v2807_v51 = vand.u32 127, %v88_v48  ;;  %v566_v52 = vpack.c.bf16 %v2723_v26, %v2736_v31  ;;  %v564_v53 = vpack.c.bf16 %v2681_v11, %v2664_v4 }
  0x32   :  { %v565_v54 = vpack.c.bf16 %v2721_v25, %v2734_v30  ;;  %v563_v55 = vpack.c.bf16 %v2679_v10, %v2662_v3  ;;  %v568_v57 = vpack.c.bf16 %v2743_v34, %v2750_v37  ;;  %v567_v58 = vpack.c.bf16 %v2741_v33, %v2748_v36 }
  0x33   :  { %v90_v56 = vadd.s32 128, %v2807_v51  ;;  %v92_v59 = vadd.s32 384, %v2807_v51  ;;  %v91_v8 = vadd.s32 256, %v2807_v51  ;;  %v93_v12 = vand.u32 255, %v2807_v51 }
  0x34   :  { %2162 = vrot.lane.b32.xlu1 %v2161_v32, %s2578_s8  ;;  %vm165_vm10 = vcmask 138240  }
  0x35   :  { %2157 = vrot.lane.b32.xlu0 %v2156_v35, %s2578_s8  ;;  %v94_v60 = vand.u32 255, %v90_v56  ;;  %v96_v61 = vand.u32 255, %v92_v59  ;;  %v95_v13 = vand.u32 255, %v91_v8  ;;  %v2879_v14 = vand.u32 15, %v93_v12 }
  0x36   :  { %vm2887_vm6 = vcmp.ge.s32.totalorder %v93_v12, 16 }
  0x37   :  { %v2825_v62 = vand.u32 15, %v94_v60  ;;  %v2829_v63 = vand.u32 15, %v96_v61  ;;  %vm2832_vm1 = vcmp.lt.s32.totalorder %v94_v60, 240  ;;  %vm2847_vm4 = vcmp.lt.s32.totalorder %v96_v61, 240 }
  0x38   :  { %2172 = vrot.lane.b32.xlu1 %v2171_v38, %s2578_s8  ;;  %vm109_vm7 = vcmp.ne.s32.totalorder %v2879_v14, 0  ;;  %vm2894_vm8 = vcmp.ge.s32.totalorder %v95_v13, 16 }
  0x39   :  { %2167 = vrot.lane.b32.xlu0 %v2166_v40, %s2578_s8  ;;  %vm110_vm0 = vcmp.ne.s32.totalorder %v2825_v62, 0  ;;  %vm112_vm3 = vcmp.ne.s32.totalorder %v2829_v63, 0  ;;  %vm2905_vm11 = vmand %vm2887_vm6, %vm109_vm7 }
  0x3a   :  { %vm2841_vm2 = vmand %vm2832_vm1, %vm110_vm0 }
  0x3b   :  { %vm2856_vm5 = vmand %vm2847_vm4, %vm112_vm3 }
  0x3c   :  { %2182 = vrot.lane.b32.xlu1 %v2141_v29, %s2579_s12  ;;  %vm2914_vm12 = vmpackc.low %vm112_vm3, %vm112_vm3  ;;  %vm274_vm3 = vcmask 130048  }
  0x3d   :  { %2177 = vrot.lane.b32.xlu0 %v2136_v21, %s2579_s12  ;;  %vm2937_vm14 = vmpackc.low %vm110_vm0, %vm110_vm0 }
  0x3e   :  { %vm1938_vm15 = vmpackc.low %vm2905_vm11, %vm2905_vm11 }
  0x3f   :  { %vm2031_vm11 = vmpackc.low %vm2894_vm8, %vm2894_vm8 }
  0x40   :  { %2192 = vrot.lane.b32.xlu1 %v2151_v24, %s2579_s12 }
  0x41   :  { %2187 = vrot.lane.b32.xlu0 %v2694_v15, %s2579_s12 }
  0x44   :  { %2202 = vrot.lane.b32.xlu1 %v2161_v32, %s2579_s12 }
  0x45   :  { %2197 = vrot.lane.b32.xlu0 %v2156_v35, %s2579_s12 }
  0x48   :  { %2212 = vrot.lane.b32.xlu1 %v2171_v38, %s2579_s12 }
  0x49   :  { %2207 = vrot.lane.b32.xlu0 %v2166_v40, %s2579_s12 }
  0x4c   :  { %2222 = vrot.lane.b32.xlu1 %v2141_v29, %s2580_s13 }
  0x4d   :  { %2217 = vrot.lane.b32.xlu0 %v2136_v21, %s2580_s13 }
  0x50   :  { %2232 = vrot.lane.b32.xlu1 %v2151_v24, %s2580_s13 }
  0x51   :  { %2227 = vrot.lane.b32.xlu0 %v2694_v15, %s2580_s13 }
  0x54   :  { %2242 = vrot.lane.b32.xlu1 %v2161_v32, %s2580_s13 }
  0x55   :  { %2237 = vrot.lane.b32.xlu0 %v2156_v35, %s2580_s13 }
  0x58   :  { %2252 = vrot.lane.b32.xlu1 %v2171_v38, %s2580_s13 }
  0x59   :  { %2247 = vrot.lane.b32.xlu0 %v2166_v40, %s2580_s13 }
  0x5c   :  { %2262 = vrot.lane.b32.xlu1 %v2141_v29, %s2581_s14 }
  0x5d   :  { %2257 = vrot.lane.b32.xlu0 %v2136_v21, %s2581_s14 }
  0x60   :  { %2272 = vrot.lane.b32.xlu1 %v2151_v24, %s2581_s14 }
  0x61   :  { %2267 = vrot.lane.b32.xlu0 %v2694_v15, %s2581_s14  ;;  %v2883_v15 = vand.u32 15, %v95_v13 }
  0x63   :  { %vm3780_vm9 = vcmp.ne.s32.totalorder %v2883_v15, 0 }
  0x64   :  { %2282 = vrot.lane.b32.xlu1 %v2161_v32, %s2581_s14  ;;  %v2586_v32 = vmov 0   ;;  %vm2925_vm13 = vmand %vm2894_vm8, %vm3780_vm9 }
  0x65   :  { %2277 = vrot.lane.b32.xlu0 %v2156_v35, %s2581_s14  ;;  %2456 = vset.pattern.permute.xlu1 %v2586_v32  ;;  %vm2022_vm0 = vmpackc.low %vm2925_vm13, %vm2925_vm13  ;;  %vm3781_vm13 = vcmp.ne.s32.totalorder %v2879_v14, 15 }
  0x66   :  { %2457 = vset.pattern.permute.xlu0 %v2586_v32  ;;  %vm3037_vm9 = vmand %vm2887_vm6, %vm3781_vm13 }
  0x67   :  { %vm1956_vm13 = vmpackc.low %vm3037_vm9, %vm3037_vm9 }
  0x68   :  { %2292 = vrot.lane.b32.xlu1 %v2171_v38, %s2581_s14  ;;  %vm3127_vm9 = vmpackc.low %vm109_vm7, %vm109_vm7  ;;  %vm3814_vm7 = vcmp.ne.s32.totalorder %v2883_v15, 0 }
  0x69   :  { %2287 = vrot.lane.b32.xlu0 %v2166_v40, %s2581_s14 }
  0x6c   :  { %2302 = vrot.lane.b32.xlu1 %v2780_v45, %s2582_s15 }
  0x6d   :  { %2297 = vrot.lane.b32.xlu0 %v2757_v39, %s2582_s15 }
  0x70   :  { %2312 = vrot.lane.b32.xlu1 %v2764_v41, %s2582_s15 }
  0x71   :  { %2307 = vrot.lane.b32.xlu0 %v2768_v42, %s2582_s15 }
  0x74   :  { %2322 = vrot.lane.b32.xlu1 %v2784_v46, %s2582_s15 }
  0x75   :  { %2317 = vrot.lane.b32.xlu0 %v2788_v47, %s2582_s15 }
  0x78   :  { %2332 = vrot.lane.b32.xlu1 %v2772_v43, %s2582_s15 }
  0x79   :  { %2327 = vrot.lane.b32.xlu0 %v2776_v44, %s2582_s15 }
  0x7c   :  { %2342 = vrot.lane.b32.xlu1 %v2780_v45, %s2583_s16 }
  0x7d   :  { %2337 = vrot.lane.b32.xlu0 %v2757_v39, %s2583_s16 }
  0x80   :  { %2352 = vrot.lane.b32.xlu1 %v2764_v41, %s2583_s16 }
  0x81   :  { %2347 = vrot.lane.b32.xlu0 %v2768_v42, %s2583_s16 }
  0x84   :  { %2362 = vrot.lane.b32.xlu1 %v2784_v46, %s2583_s16 }
  0x85   :  { %2357 = vrot.lane.b32.xlu0 %v2788_v47, %s2583_s16 }
  0x88   :  { %2372 = vrot.lane.b32.xlu1 %v2772_v43, %s2583_s16 }
  0x89   :  { %2367 = vrot.lane.b32.xlu0 %v2776_v44, %s2583_s16 }
  0x8c   :  { %2382 = vrot.lane.b32.xlu1 %v2780_v45, %s2584_s17 }
  0x8d   :  { %2377 = vrot.lane.b32.xlu0 %v2757_v39, %s2584_s17 }
  0x90   :  { %2392 = vrot.lane.b32.xlu1 %v2764_v41, %s2584_s17 }
  0x91   :  { %2387 = vrot.lane.b32.xlu0 %v2768_v42, %s2584_s17 }
  0x94   :  { %2402 = vrot.lane.b32.xlu1 %v2784_v46, %s2584_s17 }
  0x95   :  { %2397 = vrot.lane.b32.xlu0 %v2788_v47, %s2584_s17 }
  0x98   :  { %2412 = vrot.lane.b32.xlu1 %v2772_v43, %s2584_s17 }
  0x99   :  { %2407 = vrot.lane.b32.xlu0 %v2776_v44, %s2584_s17 }
  0x9c   :  { %2422 = vrot.lane.b32.xlu1 %v2780_v45, %s2585_s18 }
  0x9d   :  { %2417 = vrot.lane.b32.xlu0 %v2757_v39, %s2585_s18 }
  0x9e   :  { %v2148_v18 = vpop.permute.xlu1 %2147 }
  0x9f   :  { %v2138_v19 = vpop.permute.xlu0 %2137  ;;  %v2150_v21 = vunpack.i.h.bf16 %v2148_v18  ;;  %v2149_v23 = vunpack.i.l.bf16 %v2148_v18 }
  0xa0   :  { %2432 = vrot.lane.b32.xlu1 %v2764_v41, %s2585_s18  ;;  %v2140_v24 = vunpack.i.h.bf16 %v2138_v19  ;;  %v2139_v27 = vunpack.i.l.bf16 %v2138_v19 }
  0xa1   :  { %2427 = vrot.lane.b32.xlu0 %v2768_v42, %s2585_s18  ;;  %v168_v45 = vsel %vm165_vm10, %v2149_v23, %v2150_v21 }
  0xa2   :  { %v2153_v28 = vpop.permute.xlu1 %2152  ;;  %v194_v51 = vsel %vm165_vm10, 0.0, %v2139_v27  ;;  %v166_v59 = vsel %vm165_vm10, %v2139_v27, %v2140_v24  ;;  %v167_v60 = vsel %vm165_vm10, %v2140_v24, %v2149_v23 }
  0xa3   :  { %v2155_v35 = vunpack.i.h.bf16 %v2153_v28  ;;  %v2154_v38 = vunpack.i.l.bf16 %v2153_v28  ;;  %v2143_v39 = vpop.permute.xlu0 %2142 }
  0xa4   :  { %v2145_v41 = vunpack.i.h.bf16 %v2143_v39  ;;  %v2144_v42 = vunpack.i.l.bf16 %v2143_v39  ;;  %2442 = vrot.lane.b32.xlu1 %v2784_v46, %s2585_s18 }
  0xa5   :  { %2437 = vrot.lane.b32.xlu0 %v2788_v47, %s2585_s18  ;;  %v171_v56 = vsel %vm165_vm10, %v2154_v38, %v2155_v35 }
  0xa6   :  { %v195_v61 = vsel %vm165_vm10, 0.0, %v2144_v42  ;;  %v2163_v7 = vpop.permute.xlu1 %2162  ;;  %v2020_v8 = vpack.c.bf16 %v171_v56, %v168_v45  ;;  %v169_v12 = vsel %vm165_vm10, %v2144_v42, %v2145_v41  ;;  %v170_v47 = vsel %vm165_vm10, %v2145_v41, %v2154_v38 }
  0xa7   :  { %v2165_v13 = vunpack.i.h.bf16 %v2163_v7  ;;  %v2164_v18 = vunpack.i.l.bf16 %v2163_v7  ;;  %v2158_v19 = vpop.permute.xlu0 %2157  ;;  %v1936_v21 = vpack.c.bf16 %v169_v12, %v166_v59  ;;  %v1939_v27 = vpack.c.bf16 %v195_v61, %v194_v51  ;;  %v1446_v61 = vld [vmem:[%s3775_s3] sm:$0xff] }
  0xa8   :  { %v2160_v23 = vunpack.i.h.bf16 %v2158_v19  ;;  %v2159_v24 = vunpack.i.l.bf16 %v2158_v19  ;;  %2021 = vmatprep.subr.msk.bf16.mxu1 %vm2914_vm12, %v2020_v8  ;;  %2452 = vrot.lane.b32.xlu1 %v2772_v43, %s2585_s18  ;;  %v2023_v28 = vpack.c.bf16 %v170_v47, %v167_v60 }
  0xa9   :  { %v175_v35 = vsel %vm165_vm10, %v2164_v18, %v2165_v13  ;;  %v197_v38 = vsel %vm165_vm10, 0.0, %v2164_v18  ;;  %2447 = vrot.lane.b32.xlu0 %v2776_v44, %s2585_s18  ;;  %1937 = vmatprep.subr.msk.bf16.mxu0 %vm2937_vm14, %v1936_v21 }
  0xaa   :  { %v172_v39 = vsel %vm165_vm10, %v2159_v24, %v2160_v23  ;;  %v196_v41 = vsel %vm165_vm10, 0.0, %v2159_v24  ;;  %1940 = vmatpush1.bf16.msk.msra.mxu0 %vm1938_vm15, %v1939_v27  ;;  %2024 = vmatpush1.bf16.msk.msra.mxu1 %vm2022_vm0, %v2023_v28  ;;  %v2173_v43 = vpop.permute.xlu1 %2172 }
  0xab   :  { %v1942_v44 = vpack.c.bf16 %v175_v35, %v172_v39  ;;  %v1945_v42 = vpack.c.bf16 %v197_v38, %v196_v41  ;;  %v2175_v45 = vunpack.i.h.bf16 %v2173_v43  ;;  %v2174_v51 = vunpack.i.l.bf16 %v2173_v43  ;;  %v2168_v56 = vpop.permute.xlu0 %2167 }
  0xac   :  { %v2170_v59 = vunpack.i.h.bf16 %v2168_v56  ;;  %v2169_v60 = vunpack.i.l.bf16 %v2168_v56  ;;  %1452 = vperm.xlu1 %2456, %v1446_v61  }
  0xad   :  { %v176_v7 = vsel %vm165_vm10, %v2165_v13, %v2174_v51  ;;  %v177_v8 = vsel %vm165_vm10, %v2174_v51, %v2175_v45  ;;  %1943 = vmatprep.subr.msk.bf16.mxu0 %vm2937_vm14, %v1942_v44 }
  0xae   :  { %v173_v12 = vsel %vm165_vm10, %v2160_v23, %v2169_v60  ;;  %v174_v47 = vsel %vm165_vm10, %v2169_v60, %v2170_v59  ;;  %1946 = vmatpush1.bf16.msk.msra.mxu0 %vm1938_vm15, %v1945_v42  ;;  %v2183_v18 = vpop.permute.xlu1 %2182  ;;  %vm1947_vm10 = vmpackc.low %vm2887_vm6, %vm2887_vm6  ;;  %vm379_vm15 = vcmask 121856  }
  0xaf   :  { %v2026_v19 = vpack.c.bf16 %v177_v8, %v174_v47  ;;  %v2029_v13 = vpack.c.bf16 %v176_v7, %v173_v12  ;;  %v2185_v21 = vunpack.i.h.bf16 %v2183_v18  ;;  %v2184_v27 = vunpack.i.l.bf16 %v2183_v18  ;;  %v2178_v24 = vpop.permute.xlu0 %2177 }
  0xb0   :  { %v2180_v28 = vunpack.i.h.bf16 %v2178_v24  ;;  %v2179_v35 = vunpack.i.l.bf16 %v2178_v24 }
  0xb1   :  { %v304_v38 = vsel %vm274_vm3, 0.0, %v2184_v27  ;;  %2027 = vmatprep.subr.msk.bf16.mxu1 %vm2914_vm12, %v2026_v19  ;;  %v278_v23 = vsel %vm274_vm3, %v2184_v27, %v2185_v21 }
  0xb2   :  { %v303_v29 = vsel %vm274_vm3, 0.0, %v2179_v35  ;;  %2030 = vmatpush1.bf16.msk.msra.mxu1 %vm2022_vm0, %v2029_v13  ;;  %v2193_v39 = vpop.permute.xlu1 %2192  ;;  %v275_v41 = vsel %vm274_vm3, %v2179_v35, %v2180_v28  ;;  %vm3782_vm0 = vcmp.ne.s32.totalorder %v2825_v62, 15 }
  0xb3   :  { %v1948_v43 = vpack.c.bf16 %v304_v38, %v303_v29  ;;  %v2195_v44 = vunpack.i.h.bf16 %v2193_v39  ;;  %v2194_v42 = vunpack.i.l.bf16 %v2193_v39  ;;  %v2188_v45 = vpop.permute.xlu0 %2187  ;;  %v332_v51 = vpack.c.bf16 %v278_v23, %v275_v41  ;;  %vm3054_vm6 = vmpackc.low %vm3782_vm0, %vm3782_vm0 }
  0xb4   :  { %v2190_v56 = vunpack.i.h.bf16 %v2188_v45  ;;  %v2189_v59 = vunpack.i.l.bf16 %v2188_v45 }
  0xb5   :  { %v279_v60 = vsel %vm274_vm3, %v2185_v21, %v2194_v42  ;;  %1126 = vmatprep.subr.bf16.mxu0 %v332_v51  ;;  %v280_v48 = vsel %vm274_vm3, %v2194_v42, %v2195_v44 }
  0xb6   :  { %v276_v61 = vsel %vm274_vm3, %v2180_v28, %v2189_v59  ;;  %1949 = vmatpush1.bf16.msk.msra.mxu0 %vm1947_vm10, %v1948_v43  ;;  %v2203_v7 = vpop.permute.xlu1 %2202  ;;  %v277_v8 = vsel %vm274_vm3, %v2189_v59, %v2190_v56 }
  0xb7   :  { %v2032_v12 = vpack.c.bf16 %v279_v60, %v276_v61  ;;  %v2205_v47 = vunpack.i.h.bf16 %v2203_v7  ;;  %v2204_v18 = vunpack.i.l.bf16 %v2203_v7  ;;  %v2198_v19 = vpop.permute.xlu0 %2197  ;;  %v334_v13 = vpack.c.bf16 %v280_v48, %v277_v8 }
  0xb8   :  { %v2200_v21 = vunpack.i.h.bf16 %v2198_v19  ;;  %v2199_v27 = vunpack.i.l.bf16 %v2198_v19 }
  0xb9   :  { %v306_v24 = vsel %vm274_vm3, 0.0, %v2204_v18  ;;  %1232 = vmatprep.subr.bf16.mxu1 %v334_v13  ;;  %v284_v28 = vsel %vm274_vm3, %v2204_v18, %v2205_v47 }
  0xba   :  { %v305_v35 = vsel %vm274_vm3, 0.0, %v2199_v27  ;;  %2033 = vmatpush1.bf16.msk.msra.mxu1 %vm2031_vm11, %v2032_v12  ;;  %v2213_v38 = vpop.permute.xlu1 %2212  ;;  %v281_v23 = vsel %vm274_vm3, %v2199_v27, %v2200_v21 }
  0xbb   :  { %v1951_v29 = vpack.c.bf16 %v306_v24, %v305_v35  ;;  %v2215_v39 = vunpack.i.h.bf16 %v2213_v38  ;;  %v2214_v41 = vunpack.i.l.bf16 %v2213_v38  ;;  %v2208_v43 = vpop.permute.xlu0 %2207  ;;  %v336_v44 = vpack.c.bf16 %v284_v28, %v281_v23 }
  0xbc   :  { %v2210_v42 = vunpack.i.h.bf16 %v2208_v43  ;;  %v2209_v45 = vunpack.i.l.bf16 %v2208_v43 }
  0xbd   :  { %v285_v51 = vsel %vm274_vm3, %v2205_v47, %v2214_v41  ;;  %1128 = vmatprep.subr.bf16.mxu0 %v336_v44  ;;  %v286_v56 = vsel %vm274_vm3, %v2214_v41, %v2215_v39 }
  0xbe   :  { %v282_v59 = vsel %vm274_vm3, %v2200_v21, %v2209_v45  ;;  %1952 = vmatpush1.bf16.msk.msra.mxu0 %vm1947_vm10, %v1951_v29  ;;  %v2223_v60 = vpop.permute.xlu1 %2222  ;;  %v283_v48 = vsel %vm274_vm3, %v2209_v45, %v2210_v42  ;;  %vm115_vm3 = vcmp.ne.s32.totalorder %v2883_v15, 15  ;;  %vm3783_vm10 = vcmp.ne.s32.totalorder %v2829_v63, 15 }
  0xbf   :  { %v2035_v61 = vpack.c.bf16 %v285_v51, %v282_v59  ;;  %v2225_v7 = vunpack.i.h.bf16 %v2223_v60  ;;  %v2224_v8 = vunpack.i.l.bf16 %v2223_v60  ;;  %v2218_v12 = vpop.permute.xlu0 %2217  ;;  %v338_v47 = vpack.c.bf16 %v286_v56, %v283_v48 }
  0xc0   :  { %v2220_v18 = vunpack.i.h.bf16 %v2218_v12  ;;  %v2219_v19 = vunpack.i.l.bf16 %v2218_v12 }
  0xc1   :  { %v383_v21 = vsel %vm379_vm15, %v2224_v8, %v2225_v7  ;;  %v409_v27 = vsel %vm379_vm15, 0.0, %v2224_v8  ;;  %1234 = vmatprep.subr.bf16.mxu1 %v338_v47 }
  0xc2   :  { %v380_v24 = vsel %vm379_vm15, %v2219_v19, %v2220_v18  ;;  %v408_v28 = vsel %vm379_vm15, 0.0, %v2219_v19  ;;  %2036 = vmatpush1.bf16.msk.msra.mxu1 %vm2031_vm11, %v2035_v61  ;;  %v2233_v20 = vpop.permute.xlu1 %2232  ;;  %vm3066_vm11 = vmand %vm2894_vm8, %vm115_vm3 }
  0xc3   :  { %v1954_v38 = vpack.c.bf16 %v383_v21, %v380_v24  ;;  %v1957_v23 = vpack.c.bf16 %v409_v27, %v408_v28  ;;  %v2235_v29 = vunpack.i.h.bf16 %v2233_v20  ;;  %v2234_v39 = vunpack.i.l.bf16 %v2233_v20  ;;  %v2228_v41 = vpop.permute.xlu0 %2227  ;;  %vm3084_vm8 = vmpackc.low %vm3783_vm10, %vm3783_vm10 }
  0xc4   :  { %v2230_v43 = vunpack.i.h.bf16 %v2228_v41  ;;  %v2229_v44 = vunpack.i.l.bf16 %v2228_v41  ;;  %vm2040_vm0 = vmpackc.low %vm3066_vm11, %vm3066_vm11  ;;  %vm488_vm10 = vcmask 7168   ;;  %vm823_vm11 = vcmask 916480  }
  0xc5   :  { %v384_v45 = vsel %vm379_vm15, %v2225_v7, %v2234_v39  ;;  %v385_v51 = vsel %vm379_vm15, %v2234_v39, %v2235_v29  ;;  %1955 = vmatprep.subr.msk.bf16.mxu0 %vm3054_vm6, %v1954_v38 }
  0xc6   :  { %v381_v56 = vsel %vm379_vm15, %v2220_v18, %v2229_v44  ;;  %v382_v59 = vsel %vm379_vm15, %v2229_v44, %v2230_v43  ;;  %1958 = vmatpush1.bf16.msk.msra.mxu0 %vm1956_vm13, %v1957_v23  ;;  %v2243_v22 = vpop.permute.xlu1 %2242 }
  0xc7   :  { %v2038_v48 = vpack.c.bf16 %v385_v51, %v382_v59  ;;  %v2041_v61 = vpack.c.bf16 %v384_v45, %v381_v56  ;;  %v2245_v7 = vunpack.i.h.bf16 %v2243_v22  ;;  %v2244_v8 = vunpack.i.l.bf16 %v2243_v22  ;;  %v2238_v12 = vpop.permute.xlu0 %2237 }
  0xc8   :  { %v2240_v47 = vunpack.i.h.bf16 %v2238_v12  ;;  %v2239_v18 = vunpack.i.l.bf16 %v2238_v12 }
  0xc9   :  { %v389_v19 = vsel %vm379_vm15, %v2244_v8, %v2245_v7  ;;  %v411_v21 = vsel %vm379_vm15, 0.0, %v2244_v8  ;;  %2039 = vmatprep.subr.msk.bf16.mxu1 %vm3084_vm8, %v2038_v48 }
  0xca   :  { %v386_v27 = vsel %vm379_vm15, %v2239_v18, %v2240_v47  ;;  %v410_v24 = vsel %vm379_vm15, 0.0, %v2239_v18  ;;  %2042 = vmatpush1.bf16.msk.msra.mxu1 %vm2040_vm0, %v2041_v61  ;;  %v2253_v28 = vpop.permute.xlu1 %2252 }
  0xcb   :  { %v1960_v20 = vpack.c.bf16 %v389_v19, %v386_v27  ;;  %v1963_v38 = vpack.c.bf16 %v411_v21, %v410_v24  ;;  %v2255_v23 = vunpack.i.h.bf16 %v2253_v28  ;;  %v2254_v29 = vunpack.i.l.bf16 %v2253_v28  ;;  %v2248_v39 = vpop.permute.xlu0 %2247 }
  0xcc   :  { %v2250_v41 = vunpack.i.h.bf16 %v2248_v39  ;;  %v2249_v43 = vunpack.i.l.bf16 %v2248_v39 }
  0xcd   :  { %v390_v44 = vsel %vm379_vm15, %v2245_v7, %v2254_v29  ;;  %v391_v45 = vsel %vm379_vm15, %v2254_v29, %v2255_v23  ;;  %1961 = vmatprep.subr.msk.bf16.mxu0 %vm3054_vm6, %v1960_v20 }
  0xce   :  { %v387_v51 = vsel %vm379_vm15, %v2240_v47, %v2249_v43  ;;  %v388_v56 = vsel %vm379_vm15, %v2249_v43, %v2250_v41  ;;  %1964 = vmatpush1.bf16.msk.msra.mxu0 %vm1956_vm13, %v1963_v38  ;;  %v2263_v59 = vpop.permute.xlu1 %2262  ;;  %vm3142_vm13 = vmpackc.low %vm3814_vm7, %vm3814_vm7  ;;  %vm609_vm15 = vcmask 1039360  }
  0xcf   :  { %v2044_v22 = vpack.c.bf16 %v391_v45, %v388_v56  ;;  %v2047_v48 = vpack.c.bf16 %v390_v44, %v387_v51  ;;  %v2265_v61 = vunpack.i.h.bf16 %v2263_v59  ;;  %v2264_v7 = vunpack.i.l.bf16 %v2263_v59  ;;  %v2258_v8 = vpop.permute.xlu0 %2257 }
  0xd0   :  { %v2260_v12 = vunpack.i.h.bf16 %v2258_v8  ;;  %v2259_v18 = vunpack.i.l.bf16 %v2258_v8 }
  0xd1   :  { %v492_v19 = vsel %vm488_vm10, %v2264_v7, %v2265_v61  ;;  %v518_v47 = vsel %vm488_vm10, 0.0, %v2264_v7  ;;  %2045 = vmatprep.subr.msk.bf16.mxu1 %vm3084_vm8, %v2044_v22 }
  0xd2   :  { %v489_v13 = vsel %vm488_vm10, %v2259_v18, %v2260_v12  ;;  %v517_v21 = vsel %vm488_vm10, 0.0, %v2259_v18  ;;  %2048 = vmatpush1.bf16.msk.msra.mxu1 %vm2040_vm0, %v2047_v48  ;;  %v2273_v27 = vpop.permute.xlu1 %2272  ;;  %vm3216_vm0 = vmpackc.low %vm115_vm3, %vm115_vm3  ;;  %vm714_vm3 = vcmask 924672  }
  0xd3   :  { %v1966_v24 = vpack.c.bf16 %v492_v19, %v489_v13  ;;  %v1969_v28 = vpack.c.bf16 %v518_v47, %v517_v21  ;;  %v2275_v20 = vunpack.i.h.bf16 %v2273_v27  ;;  %v2274_v38 = vunpack.i.l.bf16 %v2273_v27  ;;  %v2268_v23 = vpop.permute.xlu0 %2267 }
  0xd4   :  { %v2270_v39 = vunpack.i.h.bf16 %v2268_v23  ;;  %v2269_v41 = vunpack.i.l.bf16 %v2268_v23 }
  0xd5   :  { %v493_v43 = vsel %vm488_vm10, %v2265_v61, %v2274_v38  ;;  %v494_v42 = vsel %vm488_vm10, %v2274_v38, %v2275_v20  ;;  %1967 = vmatprep.subr.msk.bf16.mxu0 %vm2937_vm14, %v1966_v24 }
  0xd6   :  { %v490_v44 = vsel %vm488_vm10, %v2260_v12, %v2269_v41  ;;  %v491_v45 = vsel %vm488_vm10, %v2269_v41, %v2270_v39  ;;  %1970 = vmatpush1.bf16.msk.msra.mxu0 %vm3127_vm9, %v1969_v28  ;;  %v2283_v51 = vpop.permute.xlu1 %2282 }
  0xd7   :  { %v2050_v56 = vpack.c.bf16 %v494_v42, %v491_v45  ;;  %v2053_v59 = vpack.c.bf16 %v493_v43, %v490_v44  ;;  %v2285_v22 = vunpack.i.h.bf16 %v2283_v51  ;;  %v2284_v48 = vunpack.i.l.bf16 %v2283_v51  ;;  %v2278_v7 = vpop.permute.xlu0 %2277 }
  0xd8   :  { %v2280_v8 = vunpack.i.h.bf16 %v2278_v7  ;;  %v2279_v12 = vunpack.i.l.bf16 %v2278_v7 }
  0xd9   :  { %v498_v18 = vsel %vm488_vm10, %v2284_v48, %v2285_v22  ;;  %v520_v19 = vsel %vm488_vm10, 0.0, %v2284_v48  ;;  %2051 = vmatprep.subr.msk.bf16.mxu1 %vm2914_vm12, %v2050_v56 }
  0xda   :  { %v495_v47 = vsel %vm488_vm10, %v2279_v12, %v2280_v8  ;;  %v519_v13 = vsel %vm488_vm10, 0.0, %v2279_v12  ;;  %2054 = vmatpush1.bf16.msk.msra.mxu1 %vm3142_vm13, %v2053_v59  ;;  %v2293_v21 = vpop.permute.xlu1 %2292 }
  0xdb   :  { %v1972_v27 = vpack.c.bf16 %v498_v18, %v495_v47  ;;  %v1975_v24 = vpack.c.bf16 %v520_v19, %v519_v13  ;;  %v2295_v28 = vunpack.i.h.bf16 %v2293_v21  ;;  %v2294_v20 = vunpack.i.l.bf16 %v2293_v21  ;;  %v2288_v38 = vpop.permute.xlu0 %2287 }
  0xdc   :  { %v2290_v23 = vunpack.i.h.bf16 %v2288_v38  ;;  %v2289_v39 = vunpack.i.l.bf16 %v2288_v38 }
  0xdd   :  { %v499_v41 = vsel %vm488_vm10, %v2285_v22, %v2294_v20  ;;  %v500_v43 = vsel %vm488_vm10, %v2294_v20, %v2295_v28  ;;  %1973 = vmatprep.subr.msk.bf16.mxu0 %vm2937_vm14, %v1972_v27 }
  0xde   :  { %v496_v42 = vsel %vm488_vm10, %v2280_v8, %v2289_v39  ;;  %v497_v44 = vsel %vm488_vm10, %v2289_v39, %v2290_v23  ;;  %1976 = vmatpush1.bf16.msk.msra.mxu0 %vm3127_vm9, %v1975_v24  ;;  %v2303_v45 = vpop.permute.xlu1 %2302  ;;  %vm2073_vm10 = vmpackc.low %vm2856_vm5, %vm2856_vm5 }
  0xdf   :  { %v2056_v51 = vpack.c.bf16 %v500_v43, %v497_v44  ;;  %v2059_v56 = vpack.c.bf16 %v499_v41, %v496_v42  ;;  %v2305_v59 = vunpack.i.h.bf16 %v2303_v45  ;;  %v2304_v48 = vunpack.i.l.bf16 %v2303_v45  ;;  %v2298_v7 = vpop.permute.xlu0 %2297  ;;  %1138 = vmatprep.subr.bf16.mxu0 %v562_v49  ;;  %vm2085_vm5 = vmpackc.low %vm2847_vm4, %vm2847_vm4 }
  0xe0   :  { %v2300_v46 = vunpack.i.h.bf16 %v2298_v7  ;;  %v2299_v22 = vunpack.i.l.bf16 %v2298_v7 }
  0xe1   :  { %2057 = vmatprep.subr.msk.bf16.mxu1 %vm2914_vm12, %v2056_v51  ;;  %v614_v8 = vsel %vm609_vm15, %v2304_v48, %v2305_v59  ;;  %vm3817_vm12 = vcmp.ne.s32.totalorder %v2879_v14, 15 }
  0xe2   :  { %v611_v12 = vsel %vm609_vm15, %v2299_v22, %v2300_v46  ;;  %1139 = vmatpush1.bf16.msra.mxu0 %v561_v50  ;;  %2060 = vmatpush1.bf16.msk.msra.mxu1 %vm3142_vm13, %v2059_v56  ;;  %v2313_v18 = vpop.permute.xlu1 %2312  ;;  %vm3195_vm14 = vmpackc.low %vm3817_vm12, %vm3817_vm12  ;;  %vm1115_vm12 = vcmask 261120  }
  0xe3   :  { %v2315_v19 = vunpack.i.h.bf16 %v2313_v18  ;;  %v2314_v9 = vunpack.i.l.bf16 %v2313_v18  ;;  %v2308_v17 = vpop.permute.xlu0 %2307  ;;  %1140 = vmatprep.subr.bf16.mxu0 %v566_v52  ;;  %1244 = vmatprep.subr.bf16.mxu1 %v564_v53  ;;  %v1978_v47 = vpack.c.bf16 %v614_v8, %v611_v12 }
  0xe4   :  { %v2310_v49 = vunpack.i.h.bf16 %v2308_v17  ;;  %v2309_v40 = vunpack.i.l.bf16 %v2308_v17 }
  0xe5   :  { %v639_v6 = vsel %vm609_vm15, %v2315_v19, 0.0  ;;  %v638_v16 = vsel %vm609_vm15, %v2314_v9, 0.0  ;;  %v612_v3 = vsel %vm609_vm15, %v2300_v46, %v2314_v9  ;;  %v615_v10 = vsel %vm609_vm15, %v2305_v59, %v2315_v19 }
  0xe6   :  { %v613_v50 = vsel %vm609_vm15, %v2310_v49, %v2304_v48  ;;  %v610_v13 = vsel %vm609_vm15, %v2309_v40, %v2299_v22  ;;  %1141 = vmatpush1.bf16.msra.mxu0 %v565_v54  ;;  %v2323_v26 = vpop.permute.xlu1 %2322  ;;  %1245 = vmatpush1.bf16.msra.mxu1 %v563_v55  ;;  %v2062_v25 = vpack.c.bf16 %v639_v6, %v638_v16 }
  0xe7   :  { %v1981_v31 = vpack.c.bf16 %v613_v50, %v610_v13  ;;  %v2325_v4 = vunpack.i.h.bf16 %v2323_v26  ;;  %v2324_v11 = vunpack.i.l.bf16 %v2323_v26  ;;  %v2318_v52 = vpop.permute.xlu0 %2317  ;;  %1979 = vmatprep.subr.msk.bf16.mxu0 %vm3054_vm6, %v1978_v47  ;;  %1246 = vmatprep.subr.bf16.mxu1 %v568_v57  ;;  %v2065_v57 = vpack.c.bf16 %v615_v10, %v612_v3 }
  0xe8   :  { %v2320_v30 = vunpack.i.h.bf16 %v2318_v52  ;;  %v2319_v54 = vunpack.i.l.bf16 %v2318_v52 }
  0xe9   :  { %v620_v55 = vsel %vm609_vm15, %v2324_v11, %v2325_v4 }
  0xea   :  { %v617_v14 = vsel %vm609_vm15, %v2319_v54, %v2320_v30  ;;  %1982 = vmatpush1.bf16.msk.msra.mxu0 %vm3195_vm14, %v1981_v31  ;;  %v2333_v21 = vpop.permute.xlu1 %2332  ;;  %1247 = vmatpush1.bf16.msra.mxu1 %v567_v58 }
  0xeb   :  { %v1984_v27 = vpack.c.bf16 %v620_v55, %v617_v14  ;;  %v2335_v24 = vunpack.i.h.bf16 %v2333_v21  ;;  %v2334_v34 = vunpack.i.l.bf16 %v2333_v21  ;;  %v2328_v37 = vpop.permute.xlu0 %2327  ;;  %2063 = vmatprep.subr.msk.bf16.mxu1 %vm3084_vm8, %v2062_v25 }
  0xec   :  { %v2330_v28 = vunpack.i.h.bf16 %v2328_v37  ;;  %v2329_v20 = vunpack.i.l.bf16 %v2328_v37 }
  0xed   :  { %v641_v23 = vsel %vm609_vm15, %v2335_v24, 0.0  ;;  %v618_v33 = vsel %vm609_vm15, %v2320_v30, %v2334_v34  ;;  %v621_v36 = vsel %vm609_vm15, %v2325_v4, %v2335_v24  ;;  %v640_v58 = vsel %vm609_vm15, %v2334_v34, 0.0  ;;  %1985 = vmatprep.subr.msk.bf16.mxu0 %vm3054_vm6, %v1984_v27  ;;  %vm1989_vm6 = vmpackc.low %vm2841_vm2, %vm2841_vm2 }
  0xee   :  { %v2068_v39 = vpack.c.bf16 %v641_v23, %v640_v58  ;;  %v619_v41 = vsel %vm609_vm15, %v2330_v28, %v2324_v11  ;;  %v616_v15 = vsel %vm609_vm15, %v2329_v20, %v2319_v54  ;;  %v2343_v43 = vpop.permute.xlu1 %2342  ;;  %v2071_v42 = vpack.c.bf16 %v621_v36, %v618_v33  ;;  %2066 = vmatpush1.bf16.msk.msra.mxu1 %vm3216_vm0, %v2065_v57  ;;  %vm2001_vm2 = vmpackc.low %vm2832_vm1, %vm2832_vm1 }
  0xef   :  { %v1987_v44 = vpack.c.bf16 %v619_v41, %v616_v15  ;;  %v2345_v45 = vunpack.i.h.bf16 %v2343_v43  ;;  %v2344_v51 = vunpack.i.l.bf16 %v2343_v43  ;;  %v2338_v56 = vpop.permute.xlu0 %2337 }
  0xf0   :  { %v2340_v59 = vunpack.i.h.bf16 %v2338_v56  ;;  %v2339_v48 = vunpack.i.l.bf16 %v2338_v56  ;;  %2069 = vmatprep.subr.msk.bf16.mxu1 %vm3084_vm8, %v2068_v39  ;;  %vm928_vm8 = vcmask 908288  }
  0xf1   :  { %v719_v35 = vsel %vm714_vm3, %v2344_v51, %v2345_v45  ;;  %1988 = vmatpush1.bf16.msk.msra.mxu0 %vm3195_vm14, %v1987_v44 }
  0xf2   :  { %v716_v7 = vsel %vm714_vm3, %v2339_v48, %v2340_v59  ;;  %v2353_v46 = vpop.permute.xlu1 %2352  ;;  %2072 = vmatpush1.bf16.msk.msra.mxu1 %vm3216_vm0, %v2071_v42 }
  0xf3   :  { %v1990_v22 = vpack.c.bf16 %v719_v35, %v716_v7  ;;  %v2355_v8 = vunpack.i.h.bf16 %v2353_v46  ;;  %v2354_v12 = vunpack.i.l.bf16 %v2353_v46  ;;  %v2348_v60 = vpop.permute.xlu0 %2347 }
  0xf4   :  { %v2350_v18 = vunpack.i.h.bf16 %v2348_v60  ;;  %v2349_v19 = vunpack.i.l.bf16 %v2348_v60 }
  0xf5   :  { %v744_v9 = vsel %vm714_vm3, %v2355_v8, 0.0  ;;  %v717_v17 = vsel %vm714_vm3, %v2340_v59, %v2354_v12  ;;  %v720_v49 = vsel %vm714_vm3, %v2345_v45, %v2355_v8  ;;  %v743_v40 = vsel %vm714_vm3, %v2354_v12, 0.0  ;;  %1991 = vmatprep.subr.msk.bf16.mxu0 %vm1989_vm6, %v1990_v22 }
  0xf6   :  { %v2074_v47 = vpack.c.bf16 %v744_v9, %v743_v40  ;;  %v2077_v6 = vpack.c.bf16 %v720_v49, %v717_v17  ;;  %v718_v16 = vsel %vm714_vm3, %v2350_v18, %v2344_v51  ;;  %v715_v50 = vsel %vm714_vm3, %v2349_v19, %v2339_v48  ;;  %v2363_v13 = vpop.permute.xlu1 %2362 }
  0xf7   :  { %v1993_v26 = vpack.c.bf16 %v718_v16, %v715_v50  ;;  %v2365_v31 = vunpack.i.h.bf16 %v2363_v13  ;;  %v2364_v4 = vunpack.i.l.bf16 %v2363_v13  ;;  %v2358_v11 = vpop.permute.xlu0 %2357 }
  0xf8   :  { %v2360_v52 = vunpack.i.h.bf16 %v2358_v11  ;;  %v2359_v25 = vunpack.i.l.bf16 %v2358_v11  ;;  %2075 = vmatprep.subr.msk.bf16.mxu1 %vm2073_vm10, %v2074_v47 }
  0xf9   :  { %v725_v30 = vsel %vm714_vm3, %v2364_v4, %v2365_v31  ;;  %1994 = vmatpush1.bf16.msk.msra.mxu0 %vm3127_vm9, %v1993_v26  ;;  %2078 = vmatpush1.bf16.msk.msra.mxu1 %vm3142_vm13, %v2077_v6 }
  0xfa   :  { %v722_v54 = vsel %vm714_vm3, %v2359_v25, %v2360_v52  ;;  %v2373_v3 = vpop.permute.xlu1 %2372 }
  0xfb   :  { %v1996_v10 = vpack.c.bf16 %v725_v30, %v722_v54  ;;  %v2375_v55 = vunpack.i.h.bf16 %v2373_v3  ;;  %v2374_v14 = vunpack.i.l.bf16 %v2373_v3  ;;  %v2368_v21 = vpop.permute.xlu0 %2367 }
  0xfc   :  { %v2370_v27 = vunpack.i.h.bf16 %v2368_v21  ;;  %v2369_v24 = vunpack.i.l.bf16 %v2368_v21 }
  0xfd   :  { %v746_v34 = vsel %vm714_vm3, %v2375_v55, 0.0  ;;  %v723_v37 = vsel %vm714_vm3, %v2360_v52, %v2374_v14  ;;  %v726_v57 = vsel %vm714_vm3, %v2365_v31, %v2375_v55  ;;  %v745_v28 = vsel %vm714_vm3, %v2374_v14, 0.0  ;;  %1997 = vmatprep.subr.msk.bf16.mxu0 %vm1989_vm6, %v1996_v10 }
  0xfe   :  { %v2080_v20 = vpack.c.bf16 %v746_v34, %v745_v28  ;;  %v2083_v23 = vpack.c.bf16 %v726_v57, %v723_v37  ;;  %v724_v33 = vsel %vm714_vm3, %v2370_v27, %v2364_v4  ;;  %v721_v36 = vsel %vm714_vm3, %v2369_v24, %v2359_v25  ;;  %v2383_v58 = vpop.permute.xlu1 %2382 }
  0xff   :  { %v1999_v39 = vpack.c.bf16 %v724_v33, %v721_v36  ;;  %v2385_v41 = vunpack.i.h.bf16 %v2383_v58  ;;  %v2384_v15 = vunpack.i.l.bf16 %v2383_v58  ;;  %v2378_v43 = vpop.permute.xlu0 %2377  ;;  %v2458_v36 = vld [vmem:[#allocation3] ss:$12 sps:$4 sm:$0xff]  }
 0x100   :  { %v2380_v42 = vunpack.i.h.bf16 %v2378_v43  ;;  %v2379_v44 = vunpack.i.l.bf16 %v2378_v43  ;;  %2081 = vmatprep.subr.msk.bf16.mxu1 %vm2073_vm10, %v2080_v20 }
 0x101   :  { %v828_v1 = vsel %vm823_vm11, %v2384_v15, %v2385_v41  ;;  %2000 = vmatpush1.bf16.msk.msra.mxu0 %vm3127_vm9, %v1999_v39  ;;  %2084 = vmatpush1.bf16.msk.msra.mxu1 %vm3142_vm13, %v2083_v23  ;;  %vm3822_vm9 = vcmp.ne.s32.totalorder %v2825_v62, 15  ;;  %vm3825_vm13 = vcmp.ne.s32.totalorder %v2829_v63, 15 }
 0x102   :  { %v825_v45 = vsel %vm823_vm11, %v2379_v44, %v2380_v42  ;;  %v2393_v51 = vpop.permute.xlu1 %2392  ;;  %vm3327_vm7 = vmand %vm2832_vm1, %vm3822_vm9 }
 0x103   :  { %v2002_v56 = vpack.c.bf16 %v828_v1, %v825_v45  ;;  %v2395_v59 = vunpack.i.h.bf16 %v2393_v51  ;;  %v2394_v5 = vunpack.i.l.bf16 %v2393_v51  ;;  %v2388_v48 = vpop.permute.xlu0 %2387  ;;  %vm2007_vm1 = vmpackc.low %vm3327_vm7, %vm3327_vm7 }
 0x104   :  { %v2390_v35 = vunpack.i.h.bf16 %v2388_v48  ;;  %v2389_v7 = vunpack.i.l.bf16 %v2388_v48  ;;  %vm3345_vm15 = vmand %vm2847_vm4, %vm3825_vm13 }
 0x105   :  { %v853_v46 = vsel %vm823_vm11, %v2395_v59, 0.0  ;;  %v852_v29 = vsel %vm823_vm11, %v2394_v5, 0.0  ;;  %2003 = vmatprep.subr.msk.bf16.mxu0 %vm2001_vm2, %v2002_v56  ;;  %v826_v61 = vsel %vm823_vm11, %v2380_v42, %v2394_v5  ;;  %v829_v22 = vsel %vm823_vm11, %v2385_v41, %v2395_v59  ;;  %vm2091_vm4 = vmpackc.low %vm3345_vm15, %vm3345_vm15 }
 0x106   :  { %v2086_v8 = vpack.c.bf16 %v853_v46, %v852_v29  ;;  %v2403_v12 = vpop.permute.xlu1 %2402  ;;  %v824_v60 = vsel %vm823_vm11, %v2389_v7, %v2379_v44  ;;  %v827_v18 = vsel %vm823_vm11, %v2390_v35, %v2384_v15  ;;  %v882_v19 = vpack.c.bf16 %v829_v22, %v826_v61 }
 0x107   :  { %v2405_v9 = vunpack.i.h.bf16 %v2403_v12  ;;  %v2404_v17 = vunpack.i.l.bf16 %v2403_v12  ;;  %v2398_v49 = vpop.permute.xlu0 %2397  ;;  %v880_v40 = vpack.c.bf16 %v827_v18, %v824_v60  ;;  %v2463_v60 = vld [vmem:[#allocation3 + $0x18] ss:$12 sps:$4 sm:$0xff]  }
 0x108   :  { %v2400_v47 = vunpack.i.h.bf16 %v2398_v49  ;;  %v2399_v6 = vunpack.i.l.bf16 %v2398_v49  ;;  %2087 = vmatprep.subr.msk.bf16.mxu1 %vm2085_vm5, %v2086_v8 }
 0x109   :  { %v834_v16 = vsel %vm823_vm11, %v2404_v17, %v2405_v9  ;;  %1151 = vmatpush1.bf16.msra.mxu0 %v880_v40  ;;  %1257 = vmatpush1.bf16.msra.mxu1 %v882_v19 }
 0x10a   :  { %v831_v50 = vsel %vm823_vm11, %v2399_v6, %v2400_v47  ;;  %v2413_v13 = vpop.permute.xlu1 %2412 }
 0x10b   :  { %v2005_v26 = vpack.c.bf16 %v834_v16, %v831_v50  ;;  %v2415_v31 = vunpack.i.h.bf16 %v2413_v13  ;;  %v2414_v4 = vunpack.i.l.bf16 %v2413_v13  ;;  %v2408_v11 = vpop.permute.xlu0 %2407 }
 0x10c   :  { %v2410_v52 = vunpack.i.h.bf16 %v2408_v11  ;;  %v2409_v25 = vunpack.i.l.bf16 %v2408_v11 }
 0x10d   :  { %v855_v30 = vsel %vm823_vm11, %v2415_v31, 0.0  ;;  %v854_v54 = vsel %vm823_vm11, %v2414_v4, 0.0  ;;  %2006 = vmatprep.subr.msk.bf16.mxu0 %vm2001_vm2, %v2005_v26  ;;  %v832_v3 = vsel %vm823_vm11, %v2400_v47, %v2414_v4  ;;  %v835_v10 = vsel %vm823_vm11, %v2405_v9, %v2415_v31 }
 0x10e   :  { %v2089_v55 = vpack.c.bf16 %v855_v30, %v854_v54  ;;  %v2423_v14 = vpop.permute.xlu1 %2422  ;;  %v830_v21 = vsel %vm823_vm11, %v2409_v25, %v2399_v6  ;;  %v833_v27 = vsel %vm823_vm11, %v2410_v52, %v2404_v17  ;;  %v886_v24 = vpack.c.bf16 %v835_v10, %v832_v3  ;;  %v2464_v54 = vld [vmem:[#allocation3 + $0x8] ss:$12 sps:$4 sm:$0xff]   ;;  %v2465_v3 = vld [vmem:[#allocation3 + $0x20] ss:$12 sps:$4 sm:$0xff]  }
 0x10f   :  { %v2425_v37 = vunpack.i.h.bf16 %v2423_v14  ;;  %v2424_v57 = vunpack.i.l.bf16 %v2423_v14  ;;  %v2418_v28 = vpop.permute.xlu0 %2417  ;;  %v884_v20 = vpack.c.bf16 %v833_v27, %v830_v21 }
 0x110   :  { %v2420_v23 = vunpack.i.h.bf16 %v2418_v28  ;;  %v2419_v33 = vunpack.i.l.bf16 %v2418_v28  ;;  %2090 = vmatprep.subr.msk.bf16.mxu1 %vm2085_vm5, %v2089_v55 }
 0x111   :  { %v933_v62 = vsel %vm928_vm8, %v2424_v57, %v2425_v37  ;;  %1153 = vmatpush1.bf16.msra.mxu0 %v884_v20  ;;  %1259 = vmatpush1.bf16.msra.mxu1 %v886_v24 }
 0x112   :  { %v930_v58 = vsel %vm928_vm8, %v2419_v33, %v2420_v23  ;;  %v2433_v39 = vpop.permute.xlu1 %2432 }
 0x113   :  { %v2008_v15 = vpack.c.bf16 %v933_v62, %v930_v58  ;;  %v2435_v43 = vunpack.i.h.bf16 %v2433_v39  ;;  %v2434_v42 = vunpack.i.l.bf16 %v2433_v39  ;;  %v2428_v44 = vpop.permute.xlu0 %2427 }
 0x114   :  { %v2430_v1 = vunpack.i.h.bf16 %v2428_v44  ;;  %v2429_v45 = vunpack.i.l.bf16 %v2428_v44  ;;  %1155 = vmatmul.mubr.bf16.vlgmr.msra.gmra.mrb[0].mxu0 %v2458_v36  ;;  %1261 = vmatmul.mubr.bf16.vlgmr.msra.gmra.mrb[0].mxu1 %v2458_v36 }
 0x115   :  { %v958_v51 = vsel %vm928_vm8, %v2435_v43, 0.0  ;;  %v931_v56 = vsel %vm928_vm8, %v2420_v23, %v2434_v42  ;;  %v934_v63 = vsel %vm928_vm8, %v2425_v37, %v2435_v43  ;;  %v957_v2 = vsel %vm928_vm8, %v2434_v42, 0.0  ;;  %2009 = vmatprep.subr.msk.bf16.mxu0 %vm2007_vm1, %v2008_v15  ;;  %1164 = vmatprep.mubr.bf16.mxu0 %v2461_v0 }
 0x116   :  { %v2092_v59 = vpack.c.bf16 %v958_v51, %v957_v2  ;;  %v2095_v5 = vpack.c.bf16 %v934_v63, %v931_v56  ;;  %v932_v48 = vsel %vm928_vm8, %v2430_v1, %v2424_v57  ;;  %v929_v35 = vsel %vm928_vm8, %v2429_v45, %v2419_v33  ;;  %v2443_v7 = vpop.permute.xlu1 %2442  ;;  %1270 = vmatprep.mubr.bf16.mxu1 %v2461_v0 }
 0x117   :  { %v2011_v46 = vpack.c.bf16 %v932_v48, %v929_v35  ;;  %v2445_v29 = vunpack.i.h.bf16 %v2443_v7  ;;  %v2444_v61 = vunpack.i.l.bf16 %v2443_v7  ;;  %v2438_v22 = vpop.permute.xlu0 %2437 }
 0x118   :  { %v2440_v8 = vunpack.i.h.bf16 %v2438_v22  ;;  %v2439_v12 = vunpack.i.l.bf16 %v2438_v22  ;;  %2093 = vmatprep.subr.msk.bf16.mxu1 %vm2091_vm4, %v2092_v59 }
 0x119   :  { %v939_v18 = vsel %vm928_vm8, %v2444_v61, %v2445_v29  ;;  %2012 = vmatpush1.bf16.msk.msra.mxu0 %vm3195_vm14, %v2011_v46  ;;  %2096 = vmatpush1.bf16.msk.msra.mxu1 %vm3216_vm0, %v2095_v5 }
 0x11a   :  { %v936_v19 = vsel %vm928_vm8, %v2439_v12, %v2440_v8  ;;  %v2453_v9 = vpop.permute.xlu1 %2452 }
 0x11b   :  { %v2014_v17 = vpack.c.bf16 %v939_v18, %v936_v19  ;;  %v2455_v49 = vunpack.i.h.bf16 %v2453_v9  ;;  %v2454_v40 = vunpack.i.l.bf16 %v2453_v9  ;;  %v2448_v47 = vpop.permute.xlu0 %2447 }
 0x11c   :  { %v2450_v6 = vunpack.i.h.bf16 %v2448_v47  ;;  %v2449_v16 = vunpack.i.l.bf16 %v2448_v47  ;;  %1165 = vmatmul.mubr.bf16.gmra.mrb[4].mxu0 %v2463_v60  ;;  %1271 = vmatmul.mubr.bf16.gmra.mrb[4].mxu1 %v2463_v60 }
 0x11d   :  { %v960_v50 = vsel %vm928_vm8, %v2455_v49, 0.0  ;;  %v937_v13 = vsel %vm928_vm8, %v2440_v8, %v2454_v40  ;;  %v940_v26 = vsel %vm928_vm8, %v2445_v29, %v2455_v49  ;;  %v959_v31 = vsel %vm928_vm8, %v2454_v40, 0.0  ;;  %2015 = vmatprep.subr.msk.bf16.mxu0 %vm2007_vm1, %v2014_v17  ;;  %1207 = vmatprep.mubr.bf16.mxu0 %v2586_v32 }
 0x11e   :  { %v2098_v4 = vpack.c.bf16 %v960_v50, %v959_v31  ;;  %v2101_v11 = vpack.c.bf16 %v940_v26, %v937_v13  ;;  %v938_v52 = vsel %vm928_vm8, %v2450_v6, %v2444_v61  ;;  %v935_v25 = vsel %vm928_vm8, %v2449_v16, %v2439_v12  ;;  %1313 = vmatprep.mubr.bf16.mxu1 %v2586_v32 }
 0x11f   :  { %v2017_v30 = vpack.c.bf16 %v938_v52, %v935_v25  ;;  %v1448_v52 = vld [vmem:[%s3775_s3 + $0x10] sm:$0xff]  ;;  %v1447_v25 = vld [vmem:[%s3775_s3 + $0x8] sm:$0xff] }
 0x120   :  { %2099 = vmatprep.subr.msk.bf16.mxu1 %vm2091_vm4, %v2098_v4  ;;  %v1486_v4 = vld [vmem:[%s3776_s4] sm:$0xff] }
 0x121   :  { %2018 = vmatpush1.bf16.msk.msra.mxu0 %vm3195_vm14, %v2017_v30  ;;  %2102 = vmatpush1.bf16.msk.msra.mxu1 %vm3216_vm0, %v2101_v11  ;;  %v1487_v11 = vld [vmem:[%s3776_s4 + $0x8] sm:$0xff]  ;;  %v1449_v30 = vld [vmem:[%s3775_s3 + $0x18] sm:$0xff]  ;;  %s2587_s3 = smov [#allocation8]  }
 0x122   :  { %s1906_s15 = sshll.u32 %s2587_s3, 4  ;;  %s1907_s15 = int_to_ptr.vmem [resolvable:$true] %s1906_s15 }
 0x123   :  { %s2544_s28 = scalar_lea.vmem %s1907_s15, 2048  ;;  %p2549_p3 = scmp.lt.s32.totalorder %s1907_s15, %s1907_s15 }
 0x124   :  { %1925 = vmatmul.mubr.msk.bf16.vlgmr.msra.gmra.mrb[0].mxu0 %vm1115_vm12, %v2464_v54  ;;  %1927 = vmatmul.mubr.msk.bf16.vlgmr.msra.gmra.mrb[0].mxu1 %vm1115_vm12, %v2464_v54  ;;  %v1789_v54 = vld [vmem:[%s3777_s5 + $0x8] sm:$0xff]  ;;  %p2545_p2 = scmp.ne.s32.totalorder %s1907_s15, %s2544_s28  ;;  %p2550_p4 = scmp.lt.s32.totalorder %s2544_s28, %s2544_s28 }
 0x125   :  { %1217 = vmatprep.mubr.bf16.mxu0 %v2586_v32  ;;  %1323 = vmatprep.mubr.bf16.mxu1 %v2586_v32 }
 0x126   :  { %p2551_p5 = por %p2550_p4, %p2549_p3 }
 0x128   :  { %p2552_p6 = pnand %p2551_p5, %p2545_p2 }
 0x12c   :  { %1926 = vmatmul.mubr.msk.bf16.gmra.mrb[4].mxu0 %vm1115_vm12, %v2465_v3  ;;  %1928 = vmatmul.mubr.msk.bf16.gmra.mrb[4].mxu1 %vm1115_vm12, %v2465_v3  ;;  %v1488_v3 = vld [vmem:[%s3776_s4 + $0x10] sm:$0xff] }
 0x12d   :  { %1602 = vmatprep.mubr.bf16.mxu0 %v2586_v32  ;;  %1655 = vmatprep.mubr.bf16.mxu1 %v2586_v32 }
 0x1f7   :  { %v3404_v53 = vpop.f32.mrb[0].mxu0  ;;  %v3406_v38 = vpop.f32.mrb[0].mxu1 }
 0x1f8   :  { %v1354_v10 = vmul.f32 %v3404_v53, %v3404_v53  ;;  %v3410_v55 = vpop.f32.mrb[1].mxu0  ;;  %v3412_v14 = vpop.f32.mrb[1].mxu1  ;;  %v1356_v37 = vmul.f32 %v3406_v38, %v3406_v38 }
 0x1f9   :  { %v1334_v21 = vadd.f32 %v3410_v55, %v3404_v53  ;;  %v1355_v27 = vmul.f32 %v3410_v55, %v3410_v55  ;;  %v3418_v24 = vpop.f32.mrb[2].mxu0  ;;  %v3420_v34 = vpop.f32.mrb[2].mxu1  ;;  %v1357_v58 = vmul.f32 %v3412_v14, %v3412_v14 }
 0x1fa   :  { %v1358_v57 = vmul.f32 %v3418_v24, %v3418_v24  ;;  %v3426_v28 = vpop.f32.mrb[3].mxu0  ;;  %v3428_v20 = vpop.f32.mrb[3].mxu1  ;;  %v1360_v0 = vmul.f32 %v3420_v34, %v3420_v34 }
 0x1fb   :  { %v1339_v23 = vadd.f32 %v3426_v28, %v3418_v24  ;;  %v1359_v33 = vmul.f32 %v3426_v28, %v3426_v28  ;;  %v1335_v36 = vadd.f32 %v1334_v21, %v3406_v38  ;;  %v1370_v62 = vadd.f32 %v1355_v27, %v1354_v10  ;;  %v1828_v10 = vld [vmem:[%s3778_s6] sm:$0xff]  ;;  %v1489_v21 = vld [vmem:[%s3776_s4 + $0x18] sm:$0xff] }
 0x1fc   :  { %v1361_v51 = vmul.f32 %v3428_v20, %v3428_v20  ;;  %v1788_v27 = vld [vmem:[%s3777_s5] sm:$0xff] }
 0x1fd   :  { %v1336_v39 = vadd.f32 %v1335_v36, %v3412_v14  ;;  %v1340_v41 = vadd.f32 %v1339_v23, %v3420_v34  ;;  %v1371_v15 = vadd.f32 %v1370_v62, %v1356_v37  ;;  %v1375_v43 = vadd.f32 %v1359_v33, %v1358_v57  ;;  %v1790_v37 = vld [vmem:[%s3777_s5 + $0x10] sm:$0xff]  ;;  %v1791_v57 = vld [vmem:[%s3777_s5 + $0x18] sm:$0xff]  ;;  %v1829_v23 = vld [vmem:[%s3778_s6 + $0x8] sm:$0xff]  ;;  %v1453_v33 = vpop.permute.xlu1 %1452 }
 0x1ff   :  { %1337 = vadd.xlane.f32.xlu0 %v1336_v39  ;;  %v3441_v42 = vpop.f32.mrb[4].mxu0  ;;  %v3443_v44 = vpop.f32.mrb[4].mxu1  ;;  %v1341_v1 = vadd.f32 %v1340_v41, %v3428_v20  ;;  %v1372_v45 = vadd.f32 %v1371_v15, %v1357_v58  ;;  %v1376_v56 = vadd.f32 %v1375_v43, %v1360_v0 }
 0x200   :  { %v1362_v63 = vmul.f32 %v3441_v42, %v3441_v42  ;;  %v3450_v2 = vpop.f32.mrb[5].mxu0  ;;  %v3452_v59 = vpop.f32.mrb[5].mxu1  ;;  %v1364_v29 = vmul.f32 %v3443_v44, %v3443_v44 }
 0x201   :  { %v1344_v5 = vadd.f32 %v3450_v2, %v3441_v42  ;;  %v1363_v48 = vmul.f32 %v3450_v2, %v3450_v2  ;;  %1342 = vadd.xlane.f32.xlu1 %v1341_v1  ;;  %v3458_v35 = vpop.f32.mrb[6].mxu0  ;;  %v3460_v7 = vpop.f32.mrb[6].mxu1  ;;  %v1377_v46 = vadd.f32 %v1376_v56, %v1361_v51  ;;  %v1365_v17 = vmul.f32 %v3452_v59, %v3452_v59 }
 0x202   :  { %v1366_v61 = vmul.f32 %v3458_v35, %v3458_v35  ;;  %v3466_v22 = vpop.f32.mrb[7].mxu0  ;;  %v3468_v8 = vpop.f32.mrb[7].mxu1  ;;  %v1368_v9 = vmul.f32 %v3460_v7, %v3460_v7 }
 0x203   :  { %v1349_v12 = vadd.f32 %v3466_v22, %v3458_v35  ;;  %v1367_v60 = vmul.f32 %v3466_v22, %v3466_v22  ;;  %1373 = vadd.xlane.f32.xlu0 %v1372_v45  ;;  %v1345_v18 = vadd.f32 %v1344_v5, %v3443_v44  ;;  %v1380_v19 = vadd.f32 %v1363_v48, %v1362_v63 }
 0x204   :  { %v1369_v16 = vmul.f32 %v3468_v8, %v3468_v8 }
 0x205   :  { %v1346_v49 = vadd.f32 %v1345_v18, %v3452_v59  ;;  %v1381_v40 = vadd.f32 %v1380_v19, %v1364_v29  ;;  %v1350_v47 = vadd.f32 %v1349_v12, %v3460_v7  ;;  %v1385_v6 = vadd.f32 %v1367_v60, %v1366_v61 }
 0x207   :  { %1378 = vadd.xlane.f32.xlu0 %v1377_v46  ;;  %1347 = vadd.xlane.f32.xlu1 %v1346_v49  ;;  %v1382_v50 = vadd.f32 %v1381_v40, %v1365_v17  ;;  %v1351_v13 = vadd.f32 %v1350_v47, %v3468_v8  ;;  %v1386_v26 = vadd.f32 %v1385_v6, %v1368_v9 }
 0x209   :  { %v1387_v31 = vadd.f32 %v1386_v26, %v1369_v16 }
 0x20b   :  { %1383 = vadd.xlane.f32.xlu1 %v1382_v50  ;;  %1352 = vadd.xlane.f32.xlu0 %v1351_v13 }
 0x20f   :  { %1388 = vadd.xlane.f32.xlu0 %v1387_v31 }
 0x21c   :  { %1492 = vperm.xlu1 %2456, %v1486_v4  }
 0x220   :  { %1497 = vperm.xlu1 %2456, %v1487_v11  }
 0x224   :  { %1462 = vperm.xlu1 %2456, %v1448_v52  }
 0x225   :  { %1457 = vperm.xlu0 %2457, %v1447_v25  }
 0x228   :  { %1467 = vperm.xlu1 %2456, %v1449_v30  }
 0x229   :  { %1799 = vperm.xlu0 %2457, %v1789_v54  }
 0x22c   :  { %1502 = vperm.xlu1 %2456, %v1488_v3  }
 0x22d   :  { %1834 = vperm.xlu0 %2457, %v1828_v10  }
 0x230   :  { %1507 = vperm.xlu1 %2456, %v1489_v21  }
 0x234   :  { %1794 = vperm.xlu1 %2456, %v1788_v27  }
 0x238   :  { %1804 = vperm.xlu1 %2456, %v1790_v37  }
 0x23c   :  { %1809 = vperm.xlu1 %2456, %v1791_v57  }
 0x240   :  { %1839 = vperm.xlu1 %2456, %v1829_v23  }
 0x28c   :  { %v1338_v36 = vpop.xlane.xlu0 %1337 }
 0x28d   :  { %v1390_v62 = vmul.f32 0.001953125, %v1338_v36 }
 0x28e   :  { %v1343_v0 = vpop.xlane.xlu1 %1342 }
 0x28f   :  { %v3523_v39 = vmul.f32 0.001953125, %v1343_v0  ;;  %v1398_v41 = vmul.f32 %v1390_v62, %v1390_v62  ;;  %v1406_v6 = vsub.f32 %v3404_v53, %v1390_v62  ;;  %v1407_v16 = vsub.f32 %v3410_v55, %v1390_v62 }
 0x290   :  { %v1374_v58 = vpop.xlane.xlu0 %1373  ;;  %v1408_v13 = vsub.f32 %v3406_v38, %v1390_v62  ;;  %v1409_v26 = vsub.f32 %v3412_v14, %v1390_v62 }
 0x291   :  { %v1394_v15 = vmul.f32 0.001953125, %v1374_v58  ;;  %v1399_v63 = vmul.f32 %v3523_v39, %v3523_v39  ;;  %v1410_v4 = vsub.f32 %v3418_v24, %v3523_v39  ;;  %v1411_v11 = vsub.f32 %v3426_v28, %v3523_v39 }
 0x292   :  { %v1412_v53 = vsub.f32 %v3420_v34, %v3523_v39  ;;  %v1413_v38 = vsub.f32 %v3428_v20, %v3523_v39 }
 0x293   :  { %v1402_v43 = vsub.f32 %v1394_v15, %v1398_v41 }
 0x294   :  { %v1379_v1 = vpop.xlane.xlu0 %1378  ;;  %v1348_v45 = vpop.xlane.xlu1 %1347 }
 0x295   :  { %v1422_v51 = vadd.f32 1e-05, %v1402_v43  ;;  %v1395_v56 = vmul.f32 0.001953125, %v1379_v1  ;;  %v3527_v5 = vmul.f32 0.001953125, %v1348_v45 }
 0x297   :  { %2468 = vrsqrt.f32 %v1422_v51  ;;  %v1403_v48 = vsub.f32 %v1395_v56, %v1399_v63  ;;  %v1400_v12 = vmul.f32 %v3527_v5, %v3527_v5  ;;  %v1414_v30 = vsub.f32 %v3441_v42, %v3527_v5 }
 0x298   :  { %v1384_v46 = vpop.xlane.xlu1 %1383  ;;  %v1353_v29 = vpop.xlane.xlu0 %1352  ;;  %v1415_v24 = vsub.f32 %v3450_v2, %v3527_v5  ;;  %v1416_v28 = vsub.f32 %v3443_v44, %v3527_v5  ;;  %v1417_v42 = vsub.f32 %v3452_v59, %v3527_v5 }
 0x299   :  { %v1423_v61 = vadd.f32 1e-05, %v1403_v48  ;;  %v1396_v60 = vmul.f32 0.001953125, %v1384_v46  ;;  %v3531_v18 = vmul.f32 0.001953125, %v1353_v29 }
 0x29b   :  { %2470 = vrsqrt.f32 %v1423_v61  ;;  %v1404_v19 = vsub.f32 %v1396_v60, %v1400_v12  ;;  %v1401_v40 = vmul.f32 %v3531_v18, %v3531_v18  ;;  %v1418_v57 = vsub.f32 %v3458_v35, %v3531_v18 }
 0x29c   :  { %v1493_v9 = vpop.permute.xlu1 %1492  ;;  %v1389_v17 = vpop.xlane.xlu0 %1388  ;;  %v1419_v23 = vsub.f32 %v3466_v22, %v3531_v18  ;;  %v1420_v2 = vsub.f32 %v3460_v7, %v3531_v18  ;;  %v1421_v44 = vsub.f32 %v3468_v8, %v3531_v18 }
 0x29d   :  { %v1424_v49 = vadd.f32 1e-05, %v1404_v19  ;;  %v1397_v47 = vmul.f32 0.001953125, %v1389_v17 }
 0x29f   :  { %2472 = vrsqrt.f32 %v1424_v49  ;;  %v1405_v50 = vsub.f32 %v1397_v47, %v1401_v40 }
 0x2a0   :  { %v1498_v31 = vpop.permute.xlu1 %1497 }
 0x2a1   :  { %v2469_v52 = vpop.eup %2468  ;;  %v1425_v25 = vadd.f32 1e-05, %v1405_v50 }
 0x2a2   :  { %v1430_v55 = vmul.f32 %v2469_v52, %v1406_v6  ;;  %v1431_v14 = vmul.f32 %v2469_v52, %v1407_v16  ;;  %v1432_v54 = vmul.f32 %v2469_v52, %v1408_v13  ;;  %v1433_v3 = vmul.f32 %v2469_v52, %v1409_v26 }
 0x2a3   :  { %2474 = vrsqrt.f32 %v1425_v25 }
 0x2a4   :  { %v1470_v10 = vmul.f32 %v1453_v33, %v1430_v55  ;;  %v1471_v21 = vmul.f32 %v1453_v33, %v1431_v14  ;;  %v1472_v34 = vmul.f32 %v1453_v33, %v1432_v54  ;;  %v1473_v27 = vmul.f32 %v1453_v33, %v1433_v3  ;;  %v1463_v37 = vpop.permute.xlu1 %1462  ;;  %v1458_v35 = vpop.permute.xlu0 %1457 }
 0x2a5   :  { %v2471_v20 = vpop.eup %2470 }
 0x2a6   :  { %v1510_v36 = vadd.f32 %v1493_v9, %v1470_v10  ;;  %v1511_v59 = vadd.f32 %v1493_v9, %v1471_v21  ;;  %v1512_v62 = vadd.f32 %v1493_v9, %v1472_v34  ;;  %v1513_v0 = vadd.f32 %v1493_v9, %v1473_v27 }
 0x2a7   :  { %v1434_v58 = vmul.f32 %v2471_v20, %v1410_v4  ;;  %v1435_v33 = vmul.f32 %v2471_v20, %v1411_v11  ;;  %v1436_v39 = vmul.f32 %v2471_v20, %v1412_v53  ;;  %v1437_v41 = vmul.f32 %v2471_v20, %v1413_v38 }
 0x2a8   :  { %v1526_v15 = vmax.f32 %v1510_v36, 0.0  ;;  %v1528_v43 = vmax.f32 %v1512_v62, 0.0  ;;  %v1468_v1 = vpop.permute.xlu1 %1467  ;;  %v1527_v45 = vmax.f32 %v1511_v59, 0.0  ;;  %v1529_v22 = vmax.f32 %v1513_v0, 0.0 }
 0x2a9   :  { %v2473_v51 = vpop.eup %2472  ;;  %v1474_v56 = vmul.f32 %v1458_v35, %v1434_v58  ;;  %v1475_v7 = vmul.f32 %v1458_v35, %v1435_v33  ;;  %v1476_v63 = vmul.f32 %v1458_v35, %v1436_v39  ;;  %v1477_v5 = vmul.f32 %v1458_v35, %v1437_v41  ;;  %v2466_v41 = vld [vmem:[#allocation6] sm:$0xff]  }
 0x2aa   :  { %v1438_v8 = vmul.f32 %v2473_v51, %v1414_v30  ;;  %v1439_v48 = vmul.f32 %v2473_v51, %v1415_v24  ;;  %v1440_v46 = vmul.f32 %v2473_v51, %v1416_v28  ;;  %v1441_v29 = vmul.f32 %v2473_v51, %v1417_v42 }
 0x2ab   :  { %v1514_v61 = vadd.f32 %v1498_v31, %v1474_v56  ;;  %v1516_v12 = vadd.f32 %v1498_v31, %v1476_v63  ;;  %v1515_v60 = vadd.f32 %v1498_v31, %v1475_v7  ;;  %v1517_v18 = vadd.f32 %v1498_v31, %v1477_v5 }
 0x2ac   :  { %v1478_v19 = vmul.f32 %v1463_v37, %v1438_v8  ;;  %v1479_v9 = vmul.f32 %v1463_v37, %v1439_v48  ;;  %v1480_v17 = vmul.f32 %v1463_v37, %v1440_v46  ;;  %v1481_v49 = vmul.f32 %v1463_v37, %v1441_v29  ;;  %v1503_v40 = vpop.permute.xlu1 %1502 }
 0x2ad   :  { %v2475_v47 = vpop.eup %2474  ;;  %v1530_v6 = vmax.f32 %v1514_v61, 0.0  ;;  %v1532_v16 = vmax.f32 %v1516_v12, 0.0  ;;  %v1531_v50 = vmax.f32 %v1515_v60, 0.0  ;;  %v1533_v13 = vmax.f32 %v1517_v18, 0.0 }
 0x2ae   :  { %v1442_v26 = vmul.f32 %v2475_v47, %v1418_v57  ;;  %v1443_v4 = vmul.f32 %v2475_v47, %v1419_v23  ;;  %v1444_v11 = vmul.f32 %v2475_v47, %v1420_v2  ;;  %v1445_v52 = vmul.f32 %v2475_v47, %v1421_v44 }
 0x2af   :  { %v1518_v25 = vadd.f32 %v1503_v40, %v1478_v19  ;;  %v1519_v30 = vadd.f32 %v1503_v40, %v1479_v9  ;;  %v1520_v53 = vadd.f32 %v1503_v40, %v1480_v17  ;;  %v1521_v38 = vadd.f32 %v1503_v40, %v1481_v49 }
 0x2b0   :  { %v1482_v55 = vmul.f32 %v1468_v1, %v1442_v26  ;;  %v1483_v31 = vmul.f32 %v1468_v1, %v1443_v4  ;;  %v1484_v14 = vmul.f32 %v1468_v1, %v1444_v11  ;;  %v1485_v54 = vmul.f32 %v1468_v1, %v1445_v52  ;;  %v1508_v3 = vpop.permute.xlu1 %1507 }
 0x2b1   :  { %v1534_v24 = vmax.f32 %v1518_v25, 0.0  ;;  %v1536_v28 = vmax.f32 %v1520_v53, 0.0  ;;  %v1547_v42 = vpack.c.bf16 %v1531_v50, %v1527_v45  ;;  %v1549_v10 = vpack.c.bf16 %v1533_v13, %v1529_v22 }
 0x2b2   :  { %v1522_v21 = vadd.f32 %v1508_v3, %v1482_v55  ;;  %v1523_v34 = vadd.f32 %v1508_v3, %v1483_v31  ;;  %v1524_v27 = vadd.f32 %v1508_v3, %v1484_v14  ;;  %v1525_v37 = vadd.f32 %v1508_v3, %v1485_v54 }
 0x2b3   :  { %1570 = vmatprep.subr.bf16.mxu0 %v1547_v42  ;;  %1623 = vmatprep.subr.bf16.mxu1 %v1549_v10  ;;  %v1546_v20 = vpack.c.bf16 %v1530_v6, %v1526_v15  ;;  %v1548_v57 = vpack.c.bf16 %v1532_v16, %v1528_v43  ;;  %v1535_v23 = vmax.f32 %v1519_v30, 0.0  ;;  %v1537_v2 = vmax.f32 %v1521_v38, 0.0  ;;  %v2467_v15 = vld [vmem:[#allocation6 + $0x8] sm:$0xff]  }
 0x2b4   :  { %v1538_v44 = vmax.f32 %v1522_v21, 0.0  ;;  %v1540_v36 = vmax.f32 %v1524_v27, 0.0  ;;  %v1539_v59 = vmax.f32 %v1523_v34, 0.0  ;;  %v1541_v62 = vmax.f32 %v1525_v37, 0.0 }
 0x2b5   :  { %1571 = vmatpush1.bf16.msra.mxu0 %v1546_v20  ;;  %1624 = vmatpush1.bf16.msra.mxu1 %v1548_v57 }
 0x2b6   :  { %v1551_v0 = vpack.c.bf16 %v1539_v59, %v1535_v23  ;;  %v1553_v58 = vpack.c.bf16 %v1541_v62, %v1537_v2  ;;  %v1550_v33 = vpack.c.bf16 %v1538_v44, %v1534_v24  ;;  %v1552_v39 = vpack.c.bf16 %v1540_v36, %v1536_v28  ;;  %v1831_v59 = vld [vmem:[%s3778_s6 + $0x18] sm:$0xff]  ;;  %v1830_v62 = vld [vmem:[%s3778_s6 + $0x10] sm:$0xff] }
 0x2b8   :  { %1572 = vmatprep.subr.bf16.mxu0 %v1551_v0  ;;  %1625 = vmatprep.subr.bf16.mxu1 %v1553_v58  ;;  %v1795_v0 = vpop.permute.xlu1 %1794 }
 0x2b9   :  { %1573 = vmatpush1.bf16.msra.mxu0 %v1550_v33  ;;  %1626 = vmatpush1.bf16.msra.mxu1 %v1552_v39  ;;  %v3659_v39 = vpop.permute.xlu0 %1799 }
 0x2bc   :  { %1931 = vmatmul.mubr.msk.bf16.vlgmr.msra.gmra.mrb[8].mxu0 %vm1115_vm12, %v2466_v41  ;;  %1933 = vmatmul.mubr.msk.bf16.vlgmr.msra.gmra.mrb[8].mxu1 %vm1115_vm12, %v2466_v41  ;;  %v3655_v58 = vpop.permute.xlu1 %1804 }
 0x2bd   :  { %1612 = vmatprep.mubr.bf16.mxu0 %v2586_v32  ;;  %1665 = vmatprep.mubr.bf16.mxu1 %v2586_v32 }
 0x2c0   :  { %v3657_v33 = vpop.permute.xlu1 %1809 }
 0x2c4   :  { %1932 = vmatmul.mubr.msk.bf16.gmra.mrb[12].mxu0 %vm1115_vm12, %v2467_v15  ;;  %1934 = vmatmul.mubr.msk.bf16.gmra.mrb[12].mxu1 %vm1115_vm12, %v2467_v15  ;;  %v3661_v41 = vpop.permute.xlu1 %1839  ;;  %v1835_v15 = vpop.permute.xlu0 %1834 }
 0x38f   :  { %v3569_v43 = vpop.f32.mrb[8].mxu0  ;;  %v3571_v35 = vpop.f32.mrb[8].mxu1 }
 0x390   :  { %v1696_v1 = vmul.f32 %v3569_v43, %v3569_v43  ;;  %v3575_v45 = vpop.f32.mrb[9].mxu0  ;;  %v3577_v22 = vpop.f32.mrb[9].mxu1  ;;  %v1698_v7 = vmul.f32 %v3571_v35, %v3571_v35 }
 0x391   :  { %v1676_v51 = vadd.f32 %v3575_v45, %v3569_v43  ;;  %v1697_v32 = vmul.f32 %v3575_v45, %v3575_v45  ;;  %v3583_v56 = vpop.f32.mrb[10].mxu0  ;;  %v3587_v63 = vpop.f32.mrb[10].mxu1  ;;  %v1699_v18 = vmul.f32 %v3577_v22, %v3577_v22 }
 0x392   :  { %v1700_v5 = vmul.f32 %v3583_v56, %v3583_v56  ;;  %v3591_v8 = vpop.f32.mrb[11].mxu0  ;;  %v3593_v48 = vpop.f32.mrb[11].mxu1  ;;  %v1702_v60 = vmul.f32 %v3587_v63, %v3587_v63 }
 0x393   :  { %v1681_v46 = vadd.f32 %v3591_v8, %v3583_v56  ;;  %v1701_v29 = vmul.f32 %v3591_v8, %v3591_v8  ;;  %v1677_v61 = vadd.f32 %v1676_v51, %v3571_v35  ;;  %v1712_v12 = vadd.f32 %v1697_v32, %v1696_v1 }
 0x394   :  { %v1703_v50 = vmul.f32 %v3593_v48, %v3593_v48 }
 0x395   :  { %v1678_v19 = vadd.f32 %v1677_v61, %v3577_v22  ;;  %v1682_v9 = vadd.f32 %v1681_v46, %v3587_v63  ;;  %v1713_v17 = vadd.f32 %v1712_v12, %v1698_v7  ;;  %v1717_v49 = vadd.f32 %v1701_v29, %v1700_v5 }
 0x397   :  { %1679 = vadd.xlane.f32.xlu1 %v1678_v19  ;;  %v3606_v40 = vpop.f32.mrb[12].mxu0  ;;  %v1683_v47 = vadd.f32 %v1682_v9, %v3593_v48  ;;  %v3609_v6 = vpop.f32.mrb[12].mxu1  ;;  %v1714_v16 = vadd.f32 %v1713_v17, %v1699_v18  ;;  %v1718_v13 = vadd.f32 %v1717_v49, %v1702_v60 }
 0x398   :  { %v1704_v26 = vmul.f32 %v3606_v40, %v3606_v40  ;;  %v3615_v4 = vpop.f32.mrb[13].mxu0  ;;  %v3617_v11 = vpop.f32.mrb[13].mxu1  ;;  %v1706_v53 = vmul.f32 %v3609_v6, %v3609_v6 }
 0x399   :  { %v1686_v52 = vadd.f32 %v3615_v4, %v3606_v40  ;;  %v1705_v25 = vmul.f32 %v3615_v4, %v3615_v4  ;;  %1684 = vadd.xlane.f32.xlu0 %v1683_v47  ;;  %v3623_v30 = vpop.f32.mrb[14].mxu0  ;;  %v3627_v38 = vpop.f32.mrb[14].mxu1  ;;  %v1719_v55 = vadd.f32 %v1718_v13, %v1703_v50  ;;  %v1707_v42 = vmul.f32 %v3617_v11, %v3617_v11 }
 0x39a   :  { %v1708_v31 = vmul.f32 %v3623_v30, %v3623_v30  ;;  %v3631_v14 = vpop.f32.mrb[15].mxu0  ;;  %v3633_v54 = vpop.f32.mrb[15].mxu1  ;;  %v1710_v27 = vmul.f32 %v3627_v38, %v3627_v38 }
 0x39b   :  { %v1722_v3 = vadd.f32 %v1705_v25, %v1704_v26  ;;  %v1691_v24 = vadd.f32 %v3631_v14, %v3623_v30  ;;  %v1709_v28 = vmul.f32 %v3631_v14, %v3631_v14  ;;  %1715 = vadd.xlane.f32.xlu1 %v1714_v16  ;;  %v1687_v10 = vadd.f32 %v1686_v52, %v3609_v6 }
 0x39c   :  { %v1711_v57 = vmul.f32 %v3633_v54, %v3633_v54 }
 0x39d   :  { %v1727_v21 = vadd.f32 %v1709_v28, %v1708_v31  ;;  %v1723_v34 = vadd.f32 %v1722_v3, %v1706_v53  ;;  %1720 = vadd.xlane.f32.xlu0 %v1719_v55  ;;  %v1692_v37 = vadd.f32 %v1691_v24, %v3627_v38  ;;  %v1688_v20 = vadd.f32 %v1687_v10, %v3617_v11 }
 0x39f   :  { %v1693_v23 = vadd.f32 %v1692_v37, %v3633_v54  ;;  %v1724_v2 = vadd.f32 %v1723_v34, %v1707_v42  ;;  %v1728_v44 = vadd.f32 %v1727_v21, %v1710_v27  ;;  %1689 = vadd.xlane.f32.xlu1 %v1688_v20 }
 0x3a1   :  { %1694 = vadd.xlane.f32.xlu0 %v1693_v23  ;;  %v1729_v36 = vadd.f32 %v1728_v44, %v1711_v57 }
 0x3a3   :  { %1725 = vadd.xlane.f32.xlu1 %v1724_v2 }
 0x3a5   :  { %1730 = vadd.xlane.f32.xlu0 %v1729_v36 }
 0x3b4   :  { %1849 = vperm.xlu1 %2456, %v1831_v59  }
 0x3bb   :  { %1844 = vperm.xlu0 %2457, %v1830_v62  }
 0x424   :  { %v1680_v1 = vpop.xlane.xlu1 %1679 }
 0x425   :  { %v1732_v51 = vmul.f32 0.001953125, %v1680_v1 }
 0x426   :  { %v1685_v32 = vpop.xlane.xlu0 %1684 }
 0x427   :  { %v1733_v7 = vmul.f32 0.001953125, %v1685_v32  ;;  %v1740_v46 = vmul.f32 %v1732_v51, %v1732_v51  ;;  %v1748_v28 = vsub.f32 %v3569_v43, %v1732_v51  ;;  %v1749_v42 = vsub.f32 %v3575_v45, %v1732_v51 }
 0x428   :  { %v1716_v5 = vpop.xlane.xlu1 %1715  ;;  %v1750_v21 = vsub.f32 %v3571_v35, %v1732_v51  ;;  %v1751_v34 = vsub.f32 %v3577_v22, %v1732_v51 }
 0x429   :  { %v1736_v29 = vmul.f32 0.001953125, %v1716_v5  ;;  %v1741_v60 = vmul.f32 %v1733_v7, %v1733_v7  ;;  %v1752_v27 = vsub.f32 %v3583_v56, %v1733_v7  ;;  %v1753_v20 = vsub.f32 %v3591_v8, %v1733_v7 }
 0x42a   :  { %v1721_v61 = vpop.xlane.xlu0 %1720  ;;  %v1754_v57 = vsub.f32 %v3587_v63, %v1733_v7  ;;  %v1755_v23 = vsub.f32 %v3593_v48, %v1733_v7 }
 0x42b   :  { %v1744_v12 = vsub.f32 %v1736_v29, %v1740_v46  ;;  %v1737_v18 = vmul.f32 0.001953125, %v1721_v61 }
 0x42c   :  { %v1690_v17 = vpop.xlane.xlu1 %1689 }
 0x42d   :  { %v1764_v19 = vadd.f32 1e-05, %v1744_v12  ;;  %v1745_v9 = vsub.f32 %v1737_v18, %v1741_v60  ;;  %v3663_v49 = vmul.f32 0.001953125, %v1690_v17  ;;  %v2485_v60 = vld [vmem:[%s3772_s0 + $0x8] sm:$0xff] }
 0x42e   :  { %v1695_v47 = vpop.xlane.xlu0 %1694 }
 0x42f   :  { %2476 = vrsqrt.f32 %v1764_v19  ;;  %v1765_v16 = vadd.f32 1e-05, %v1745_v9  ;;  %v3665_v50 = vmul.f32 0.001953125, %v1695_v47  ;;  %v1742_v26 = vmul.f32 %v3663_v49, %v3663_v49  ;;  %v2487_v9 = vld [vmem:[%s3772_s0 + $0x48] sm:$0xff] }
 0x430   :  { %v1726_v13 = vpop.xlane.xlu1 %1725  ;;  %v1756_v22 = vsub.f32 %v3606_v40, %v3663_v49  ;;  %v1757_v56 = vsub.f32 %v3615_v4, %v3663_v49  ;;  %v1758_v63 = vsub.f32 %v3609_v6, %v3663_v49 }
 0x431   :  { %2478 = vrsqrt.f32 %v1765_v16  ;;  %v1738_v52 = vmul.f32 0.001953125, %v1726_v13  ;;  %v1743_v53 = vmul.f32 %v3665_v50, %v3665_v50  ;;  %v1760_v35 = vsub.f32 %v3623_v30, %v3665_v50 }
 0x432   :  { %v1731_v25 = vpop.xlane.xlu0 %1730 }
 0x433   :  { %v1739_v55 = vmul.f32 0.001953125, %v1731_v25  ;;  %v1746_v31 = vsub.f32 %v1738_v52, %v1742_v26  ;;  %v1761_v52 = vsub.f32 %v3631_v14, %v3665_v50  ;;  %v1762_v25 = vsub.f32 %v3627_v38, %v3665_v50  ;;  %v2490_v38 = vld [vmem:[%s3772_s0 + $0x50] sm:$0xff] }
 0x435   :  { %v1747_v3 = vsub.f32 %v1739_v55, %v1743_v53  ;;  %v1766_v24 = vadd.f32 1e-05, %v1746_v31  ;;  %v1763_v53 = vsub.f32 %v3633_v54, %v3665_v50  ;;  %v1759_v55 = vsub.f32 %v3617_v11, %v3663_v49  ;;  %v2491_v11 = vld [vmem:[%s3772_s0 + $0x58] sm:$0xff] }
 0x437   :  { %v1767_v10 = vadd.f32 1e-05, %v1747_v3  ;;  %2480 = vrsqrt.f32 %v1766_v24  ;;  %v2489_v24 = vld [vmem:[%s3772_s0 + $0x18] sm:$0xff] }
 0x439   :  { %v2477_v37 = vpop.eup %2476  ;;  %2482 = vrsqrt.f32 %v1767_v10 }
 0x43a   :  { %v1772_v2 = vmul.f32 %v2477_v37, %v1748_v28  ;;  %v1773_v43 = vmul.f32 %v2477_v37, %v1749_v42  ;;  %v1774_v44 = vmul.f32 %v2477_v37, %v1750_v21  ;;  %v1775_v45 = vmul.f32 %v2477_v37, %v1751_v34 }
 0x43b   :  { %v2479_v36 = vpop.eup %2478 }
 0x43c   :  { %v1812_v8 = vmul.f32 %v1795_v0, %v1772_v2  ;;  %v1813_v48 = vmul.f32 %v1795_v0, %v1773_v43  ;;  %v1814_v59 = vmul.f32 %v1795_v0, %v1774_v44  ;;  %v1815_v62 = vmul.f32 %v1795_v0, %v1775_v45  ;;  %v2484_v0 = vld [vmem:[%s3772_s0] sm:$0xff]  ;;  %v1850_v43 = vpop.permute.xlu1 %1849 }
 0x43d   :  { %v1776_v1 = vmul.f32 %v2479_v36, %v1752_v27  ;;  %v1777_v51 = vmul.f32 %v2479_v36, %v1753_v20  ;;  %v1778_v32 = vmul.f32 %v2479_v36, %v1754_v57  ;;  %v1779_v7 = vmul.f32 %v2479_v36, %v1755_v23 }
 0x43e   :  { %v1852_v5 = vadd.f32 %v1835_v15, %v1812_v8  ;;  %v1853_v46 = vadd.f32 %v1835_v15, %v1813_v48  ;;  %v1854_v30 = vadd.f32 %v1835_v15, %v1814_v59  ;;  %v1855_v29 = vadd.f32 %v1835_v15, %v1815_v62  ;;  %v2486_v15 = vld [vmem:[%s3772_s0 + $0x40] sm:$0xff]  ;;  %v1845_v48 = vpop.permute.xlu0 %1844 }
 0x43f   :  { %v1816_v40 = vmul.f32 %v3659_v39, %v1776_v1  ;;  %v1817_v61 = vmul.f32 %v3659_v39, %v1777_v51  ;;  %v1818_v4 = vmul.f32 %v3659_v39, %v1778_v32  ;;  %v1819_v6 = vmul.f32 %v3659_v39, %v1779_v7  ;;  %v2492_v51 = vld [vmem:[%s3772_s0 + $0x30] sm:$0xff] }
 0x440   :  { %v1868_v12 = vadd.f32 %v2484_v0, %v1852_v5  ;;  %v1869_v18 = vadd.f32 %v2485_v60, %v1853_v46  ;;  %v1884_v19 = vadd.f32 %v2486_v15, %v1854_v30  ;;  %v1885_v39 = vadd.f32 %v2487_v9, %v1855_v29  ;;  %v2494_v5 = vld [vmem:[%s3772_s0 + $0x70] sm:$0xff]  ;;  %v2495_v30 = vld [vmem:[%s3772_s0 + $0x78] sm:$0xff]  ;;  %v2498_v0 = vld [vmem:[%s3772_s0 + $0x60] sm:$0xff] }
 0x441   :  { %v1856_v17 = vadd.f32 %v3661_v41, %v1816_v40  ;;  %v1857_v47 = vadd.f32 %v3661_v41, %v1817_v61  ;;  %v1858_v16 = vadd.f32 %v3661_v41, %v1818_v4  ;;  %v1859_v13 = vadd.f32 %v3661_v41, %v1819_v6  ;;  %v2481_v26 = vpop.eup %2480  ;;  %v2488_v41 = vld [vmem:[%s3772_s0 + $0x10] sm:$0xff]  ;;  %v2496_v40 = vld [vmem:[%s3772_s0 + $0x20] sm:$0xff]  ;;  %v2497_v4 = vld [vmem:[%s3772_s0 + $0x28] sm:$0xff] }
 0x442   :  { %1876 = vst [vmem:[#allocation8] sm:$0xff] %v1868_v12  ;;  %1877 = vst [vmem:[#allocation8 + $0x8] sm:$0xff] %v1869_v18  ;;  %v1780_v21 = vmul.f32 %v2481_v26, %v1756_v22  ;;  %v1781_v34 = vmul.f32 %v2481_v26, %v1757_v56  ;;  %v1782_v27 = vmul.f32 %v2481_v26, %v1758_v63  ;;  %v2499_v60 = vld [vmem:[%s3772_s0 + $0x68] sm:$0xff] }
 0x443   :  { %1893 = vst [vmem:[#allocation8 + $0x40] sm:$0xff] %v1884_v19  ;;  %1894 = vst [vmem:[#allocation8 + $0x48] sm:$0xff] %v1885_v39  ;;  %v2483_v31 = vpop.eup %2482  ;;  %v1870_v3 = vadd.f32 %v2488_v41, %v1856_v17  ;;  %v1871_v14 = vadd.f32 %v2489_v24, %v1857_v47  ;;  %v1886_v28 = vadd.f32 %v2490_v38, %v1858_v16 }
 0x444   :  { %v1887_v54 = vadd.f32 %v2491_v11, %v1859_v13  ;;  %v1784_v49 = vmul.f32 %v2483_v31, %v1760_v35  ;;  %v1785_v50 = vmul.f32 %v2483_v31, %v1761_v52  ;;  %v1786_v42 = vmul.f32 %v2483_v31, %v1762_v25 }
 0x445   :  { %v1787_v10 = vmul.f32 %v2483_v31, %v1763_v53  ;;  %1878 = vst [vmem:[#allocation8 + $0x10] sm:$0xff] %v1870_v3  ;;  %1879 = vst [vmem:[#allocation8 + $0x18] sm:$0xff] %v1871_v14  ;;  %v1783_v37 = vmul.f32 %v2481_v26, %v1759_v55  ;;  %v1820_v44 = vmul.f32 %v3655_v58, %v1780_v21 }
 0x446   :  { %1895 = vst [vmem:[#allocation8 + $0x50] sm:$0xff] %v1886_v28  ;;  %1896 = vst [vmem:[#allocation8 + $0x58] sm:$0xff] %v1887_v54  ;;  %v1824_v20 = vmul.f32 %v3657_v33, %v1784_v49  ;;  %v1825_v57 = vmul.f32 %v3657_v33, %v1785_v50  ;;  %v1826_v23 = vmul.f32 %v3657_v33, %v1786_v42 }
 0x447   :  { %v1827_v2 = vmul.f32 %v3657_v33, %v1787_v10  ;;  %v1821_v45 = vmul.f32 %v3655_v58, %v1781_v34  ;;  %v1822_v36 = vmul.f32 %v3655_v58, %v1782_v27  ;;  %v1823_v35 = vmul.f32 %v3655_v58, %v1783_v37  ;;  %v2493_v58 = vld [vmem:[%s3772_s0 + $0x38] sm:$0xff] }
 0x448   :  { %v1864_v22 = vadd.f32 %v1850_v43, %v1824_v20  ;;  %v1865_v56 = vadd.f32 %v1850_v43, %v1825_v57  ;;  %v1866_v63 = vadd.f32 %v1850_v43, %v1826_v23  ;;  %v1860_v59 = vadd.f32 %v1845_v48, %v1820_v44 }
 0x449   :  { %v1867_v8 = vadd.f32 %v1850_v43, %v1827_v2  ;;  %v1861_v62 = vadd.f32 %v1845_v48, %v1821_v45  ;;  %v1862_v1 = vadd.f32 %v1845_v48, %v1822_v36  ;;  %v1863_v33 = vadd.f32 %v1845_v48, %v1823_v35 }
 0x44a   :  { %v1874_v32 = vadd.f32 %v2492_v51, %v1864_v22  ;;  %v1875_v7 = vadd.f32 %v2493_v58, %v1865_v56  ;;  %v1890_v46 = vadd.f32 %v2494_v5, %v1866_v63  ;;  %v1872_v61 = vadd.f32 %v2496_v40, %v1860_v59 }
 0x44b   :  { %v1891_v29 = vadd.f32 %v2495_v30, %v1867_v8  ;;  %v1873_v6 = vadd.f32 %v2497_v4, %v1861_v62  ;;  %v1888_v12 = vadd.f32 %v2498_v0, %v1862_v1  ;;  %v1889_v18 = vadd.f32 %v2499_v60, %v1863_v33 }
 0x44c   :  { %1882 = vst [vmem:[#allocation8 + $0x30] sm:$0xff] %v1874_v32  ;;  %1883 = vst [vmem:[#allocation8 + $0x38] sm:$0xff] %v1875_v7 }
 0x44d   :  { %1899 = vst [vmem:[#allocation8 + $0x70] sm:$0xff] %v1890_v46  ;;  %1900 = vst [vmem:[#allocation8 + $0x78] sm:$0xff] %v1891_v29 }
 0x44e   :  { %1880 = vst [vmem:[#allocation8 + $0x20] sm:$0xff] %v1872_v61  ;;  %1881 = vst [vmem:[#allocation8 + $0x28] sm:$0xff] %v1873_v6 }
 0x44f   :  { %1897 = vst [vmem:[#allocation8 + $0x60] sm:$0xff] %v1888_v12  ;;  %1898 = vst [vmem:[#allocation8 + $0x68] sm:$0xff] %v1889_v18 }
 0x450   :  { %2555 = shalt.err (!%p2552_p6)
}
 0x451   :  { %s2556_s0 = scalar_lea.hbm %s3779_s7, 2048 }
 0x452   :  { %p2557_p7 = scmp.ne.s32.totalorder %s3779_s7, %s2556_s0  ;;  %p2560_p8 = scmp.lt.u32.totalorder %s2556_s0, %s3779_s7 }
 0x454   :  { %p2562_p9 = pnand %p2560_p8, %p2557_p7 }
 0x456   :  { %2565 = shalt.err (!%p2562_p9)
}
 0x457   :  { %s2588_s11 = smov 256  }
 0x458   :  { %1912 = dma.vmem_to_hbm [thread:$0]  %s1907_s15, 2048, %s3779_s7, [#allocation5], %s2588_s11, %s2588_s11, %s2579_s12  }
 0x459   :  { %2570 = dma.done.wait [#allocation5], 2048  }
 0x45a   :  { %2571 = vsyncadd [#allocation5], 4294965248 }
 0x45b   :  { %1916 = vsyncpa [#allocation4], 1 }
 0x45c   :  { %1917 = vsyncpa [#allocation7], 1 }
 0x45d   :  { %1918 = vsyncpa [#allocation5], 1 }

</bundles_post_ra>
